<compile_context>
chip_gen: v6e
topology: v6e:2x2x1
jax: 0.10.0
libtpu: 0.0.40
codegen_flags: <defaults>
</compile_context>

<pallas_src>
import math
import numpy as np
import jax
import jax.numpy as jnp
from jax import lax
from jax.experimental import pallas as pl
from jax.experimental.pallas import tpu as pltpu

# ----------------------------------------------------------------------------
# Config (mirrors `configs.*` used by the PyTorch module __init__)
# ----------------------------------------------------------------------------
SEQ_LEN    = 8      # configs.seq_len
D_FEAT     = 8      # configs.d_feat  (== d_model of the encoder)
N_HEADS    = 2      # configs.n_heads (head split is numerically a no-op here)
E_LAYERS   = 2      # configs.e_layers
D_FF       = 16     # configs.d_ff
MOVING_AVG = 5      # configs.moving_avg (odd -> length preserving decomposition)
FACTOR     = 1      # configs.factor
TOP_K      = max(1, int(FACTOR * math.log(SEQ_LEN)))   # AutoCorrelation top-k (=2)
BATCH      = 2
LN_EPS     = 1e-5
OUT_PAD_R  = 8      # lane/sublane-dense padded output slab per batch element
OUT_PAD_C  = 128


def _r8(n):
    return ((n + 7) // 8) * 8


# ----------------------------------------------------------------------------
# Packed weight buffer layout (single VMEM-resident f32 buffer, width = 3*D)
# Every section starts on an 8-row (sublane-tile) boundary.
# ----------------------------------------------------------------------------
W_COLS   = 3 * D_FEAT                 # 24
STRIDE_D = _r8(D_FEAT)                # 8
STRIDE_F = _r8(D_FF)                  # 16

OFF_WC   = 0                                      # (3D, D)   circular-conv taps stacked
OFF_WQKV = OFF_WC + _r8(3 * D_FEAT)               # E x (D, 3D)   fused Q|K|V
OFF_BQKV = OFF_WQKV + E_LAYERS * STRIDE_D         # E rows  (1, 3D)
OFF_WO   = _r8(OFF_BQKV + E_LAYERS)               # E x (D, D)
OFF_BO   = OFF_WO + E_LAYERS * STRIDE_D           # E rows  (1, D)
OFF_W1   = _r8(OFF_BO + E_LAYERS)                 # E x (D, F)
OFF_W2   = OFF_W1 + E_LAYERS * STRIDE_D           # E x (F, D)
OFF_LNG  = OFF_W2 + E_LAYERS * STRIDE_F           # (1, D)
OFF_LNB  = OFF_LNG + 1                            # (1, D)
OFF_BP   = OFF_LNB + 1                            # (1, 1)
OFF_WP   = _r8(OFF_BP + 1)                        # (L, D)
OFF_WMOV = OFF_WP + _r8(SEQ_LEN)                  # (L, L)   moving-average matrix
OFF_S    = OFF_WMOV + _r8(SEQ_LEN)                # (L*L, L) delay one-hot sum matrix
W_ROWS   = _r8(OFF_S + SEQ_LEN * SEQ_LEN)         # 208


def _moving_avg_matrix(L, k):
    """(L,L) matrix implementing series_decomp's edge-padded AvgPool1d (stride 1)."""
    pad = (k - 1) // 2
    w = np.zeros((L, L), np.float32)
    for t in range(L):
        for j in range(k):
            s = min(max(t + j - pad, 0), L - 1)
            w[t, s] += 1.0 / k
    return w


def _delay_sum_matrix(L):
    """S[t*L + s, tau] = 1 iff (t - s) % L == tau  (circular-correlation diagonal sums)."""
    S = np.zeros((L * L, L), np.float32)
    for t in range(L):
        for s in range(L):
            S[t * L + s, (t - s) % L] = 1.0
    return S


# ----------------------------------------------------------------------------
# Pallas kernel: full forward pass for ONE batch element (grid over batch)
# ----------------------------------------------------------------------------
def autoformer_kernel(x_ref, xmark_ref, w_ref, out_ref):
    L, D, F = SEQ_LEN, D_FEAT, D_FF
    f32 = jnp.float32

    def gelu(v):  # exact (erf) gelu, matching F.gelu default
        return 0.5 * v * (1.0 + lax.erf(v * (1.0 / math.sqrt(2.0))))

    def dot(a, b):
        return jnp.dot(a, b, preferred_element_type=f32)

    x = x_ref[...]          # (L, D)
    xmark = xmark_ref[...]  # (L, D)

    wmov  = w_ref[OFF_WMOV:OFF_WMOV + L, 0:L]        # (L, L)
    s_mat = w_ref[OFF_S:OFF_S + L * L, 0:L]          # (L*L, L)

    # Static index helpers (built once per program; tiny).
    ti = lax.broadcasted_iota(jnp.int32, (L, L), 0)  # output time index t
    si = lax.broadcasted_iota(jnp.int32, (L, L), 1)  # source time index s
    rel_fwd = (si - ti + L) % L                      # (s - t) mod L
    iota_l = lax.broadcasted_iota(jnp.int32, (1, L), 1)

    # --- DataEmbedding_wo_pos: TokenEmbedding = circular Conv1d(k=3, no bias) ---
    #   enc[t] = x[(t-1)%L] @ Wc[0] + x[t] @ Wc[1] + x[(t+1)%L] @ Wc[2]
    # Static rolls lower to cheap sublane shifts; one fused (L,3D)@(3D,D) matmul.
    wc = w_ref[OFF_WC:OFF_WC + 3 * D, 0:D]           # (3D, D)
    xcat = jnp.concatenate(
        [jnp.roll(x, 1, axis=0), x, jnp.roll(x, -1, axis=0)], axis=1)  # (L, 3D)
    enc = dot(xcat, wc)                              # dropout: identity (eval mode)

    # --- Encoder: e_layers x EncoderLayer(AutoCorrelation) ---
    for l in range(E_LAYERS):
        wqkv = w_ref[OFF_WQKV + STRIDE_D * l:OFF_WQKV + STRIDE_D * l + D, 0:3 * D]
        bqkv = w_ref[OFF_BQKV + l:OFF_BQKV + l + 1, 0:3 * D]
        wo   = w_ref[OFF_WO + STRIDE_D * l:OFF_WO + STRIDE_D * l + D, 0:D]
        bo   = w_ref[OFF_BO + l:OFF_BO + l + 1, 0:D]
        w1   = w_ref[OFF_W1 + STRIDE_D * l:OFF_W1 + STRIDE_D * l + D, 0:F]
        w2   = w_ref[OFF_W2 + STRIDE_F * l:OFF_W2 + STRIDE_F * l + F, 0:D]

        # Fused Q/K/V projection (head split/merge is a numerical no-op for this op).
        qkv = dot(enc, wqkv) + bqkv                  # (L, 3D)
        q = qkv[:, 0:D]
        k = qkv[:, D:2 * D]
        v = qkv[:, 2 * D:3 * D]

        # Circular auto-correlation averaged over heads & channels:
        #   mv[tau] = (1/D) * sum_{t,d} q[t,d] * k[(t-tau)%L, d]
        # == irfft(rfft(q)*conj(rfft(k))) averaged over channels (irfft's 1/L cancels
        # the L from the circular delta -> no extra 1/L scaling).
        c = lax.dot_general(q, k, (((1,), (1,)), ((), ())),
                            preferred_element_type=f32)                  # (L, L) = q k^T
        c_flat = jnp.concatenate([c[t:t + 1, :] for t in range(L)], axis=1)  # (1, L*L)
        mv = dot(c_flat, s_mat) * (1.0 / D)                              # (1, L)

        # top-k delays + softmax weights (time_delay_agg_inference, eval branch)
        rem = mv
        vals, idxs = [], []
        for _ in range(TOP_K):
            m = jnp.max(rem, axis=1, keepdims=True)            # (1,1)
            cand = jnp.where(rem >= m, iota_l, L)
            idx = jnp.min(cand, axis=1, keepdims=True)         # (1,1) int32
            vals.append(m)
            idxs.append(idx)
            rem = jnp.where(iota_l == idx, jnp.float32(-1e30), rem)
        # TODO(synk): torch.topk tie ordering on exactly-equal correlation values may differ.
        exps = [jnp.exp(vv - vals[0]) for vv in vals]
        den = exps[0]
        for e_ in exps[1:]:
            den = den + e_

        # aggregation matrix M[t,s] = sum_i p_i * 1{(s - t) % L == delay_i}
        M = jnp.zeros((L, L), f32)
        for i in range(TOP_K):
            p_i = exps[i] / den                                # (1,1)
            M = M + p_i * (rel_fwd == idxs[i]).astype(f32)
        agg = dot(M, v)                                        # (L, D)

        new_x = dot(agg, wo) + bo                              # out_projection

        # EncoderLayer: residual + series_decomp + 1x1-conv feed-forward
        y0 = enc + new_x                                       # dropout inactive
        x1 = y0 - dot(wmov, y0)                                # decomp1 (residual part)
        h = gelu(dot(x1, w1))                                  # conv1 (no bias) + act
        y = dot(h, w2)                                         # conv2 (no bias)
        z = x1 + y
        enc = z - dot(wmov, z)                                 # decomp2 (residual part)

    # --- my_Layernorm (LayerNorm over D, then subtract time-mean) ---
    lng = w_ref[OFF_LNG:OFF_LNG + 1, 0:D]
    lnb = w_ref[OFF_LNB:OFF_LNB + 1, 0:D]
    mu = jnp.mean(enc, axis=1, keepdims=True)
    var = jnp.mean((enc - mu) ** 2, axis=1, keepdims=True)
    xhat = (enc - mu) * lax.rsqrt(var + LN_EPS)
    xhat = xhat * lng + lnb
    enc = xhat - jnp.mean(xhat, axis=0, keepdims=True)

    # --- regression head: gelu, mask-multiply, flatten, Linear(L*D -> 1) ---
    wp = w_ref[OFF_WP:OFF_WP + L, 0:D]
    bp = w_ref[OFF_BP:OFF_BP + 1, 0:1]
    prod = gelu(enc) * xmark * wp                              # (L, D)
    res = jnp.sum(jnp.sum(prod, axis=1, keepdims=True), axis=0, keepdims=True) + bp

    out_ref[...] = jnp.broadcast_to(res, out_ref.shape)        # lane-dense padded store


# ----------------------------------------------------------------------------
# Wrapper (reshape/permute glue + pallas_call)
# ----------------------------------------------------------------------------
def autoformer_forward(x_enc, x_mark_enc, x_dec, x_mark_dec, wbuf):
    del x_dec, x_mark_dec  # unused by Model.forward
    B = x_enc.shape[0]
    # x_enc.reshape(B, d_feat, -1).permute(0, 2, 1)  -> (B, L, D)
    x = jnp.transpose(x_enc.reshape(B, D_FEAT, SEQ_LEN), (0, 2, 1)).astype(jnp.float32)
    xm = jnp.transpose(x_mark_enc.reshape(B, D_FEAT, SEQ_LEN), (0, 2, 1)).astype(jnp.float32)

    out = pl.pallas_call(
        autoformer_kernel,
        out_shape=jax.ShapeDtypeStruct((B, OUT_PAD_R, OUT_PAD_C), jnp.float32),
        grid=(B,),
        in_specs=[
            pl.BlockSpec((None, SEQ_LEN, D_FEAT), lambda b: (b, 0, 0)),   # x (one seq / step)
            pl.BlockSpec((None, SEQ_LEN, D_FEAT), lambda b: (b, 0, 0)),   # x_mark
            pl.BlockSpec((W_ROWS, W_COLS), lambda b: (0, 0)),             # packed weights
        ],
        out_specs=pl.BlockSpec((None, OUT_PAD_R, OUT_PAD_C), lambda b: (b, 0, 0)),
        compiler_params=pltpu.CompilerParams(dimension_semantics=("parallel",)),
    )(x, xm, wbuf)
    return out[:, 0, 0]   # dec_out.squeeze()


# ----------------------------------------------------------------------------
# Parameter construction + host-side packing into the single weight buffer
# ----------------------------------------------------------------------------
def make_params(key):
    D, L, E, F = D_FEAT, SEQ_LEN, E_LAYERS, D_FF
    ks = jax.random.split(key, 12)

    def rnd(k, shape, scale):
        return np.asarray(jax.random.normal(k, shape, jnp.float32)) * scale

    return dict(
        # TokenEmbedding Conv1d weight (out,in,3) stored as (3, in, out); tap j multiplies
        # x[(t + j - 1) % L]   (circular padding=1)
        wc=rnd(ks[0], (3, D, D), 1.0 / math.sqrt(3 * D)),
        # per-layer Q/K/V/out projections, stored (in, out); biases (1, D)
        wq=rnd(ks[1], (E, D, D), 1.0 / math.sqrt(D)), bq=rnd(ks[2], (E, 1, D), 0.02),
        wk=rnd(ks[3], (E, D, D), 1.0 / math.sqrt(D)), bk=rnd(ks[4], (E, 1, D), 0.02),
        wv=rnd(ks[5], (E, D, D), 1.0 / math.sqrt(D)), bv=rnd(ks[6], (E, 1, D), 0.02),
        wo=rnd(ks[7], (E, D, D), 1.0 / math.sqrt(D)), bo=rnd(ks[8], (E, 1, D), 0.02),
        # feed-forward 1x1 convs (no bias), stored (in, out)
        w1=rnd(ks[9], (E, D, F), 1.0 / math.sqrt(D)),
        w2=rnd(ks[10], (E, F, D), 1.0 / math.sqrt(F)),
        # my_Layernorm's nn.LayerNorm default init
        lng=np.ones((1, D), np.float32),
        lnb=np.zeros((1, D), np.float32),
        # final projection Linear(d_feat*seq_len, 1); weight reshaped to (L, D)
        wp=rnd(ks[11], (L, D), 1.0 / math.sqrt(L * D)),
        bp=np.zeros((1, 1), np.float32),
    )


def pack_weights(p):
    D, L, E, F = D_FEAT, SEQ_LEN, E_LAYERS, D_FF
    buf = np.zeros((W_ROWS, W_COLS), np.float32)
    buf[OFF_WC:OFF_WC + 3 * D, 0:D] = np.asarray(p['wc']).reshape(3 * D, D)
    for l in range(E):
        buf[OFF_WQKV + STRIDE_D * l:OFF_WQKV + STRIDE_D * l + D, 0:3 * D] = np.concatenate(
            [p['wq'][l], p['wk'][l], p['wv'][l]], axis=1)
        buf[OFF_BQKV + l, 0:3 * D] = np.concatenate(
            [p['bq'][l][0], p['bk'][l][0], p['bv'][l][0]], axis=0)
        buf[OFF_WO + STRIDE_D * l:OFF_WO + STRIDE_D * l + D, 0:D] = p['wo'][l]
        buf[OFF_BO + l, 0:D] = p['bo'][l][0]
        buf[OFF_W1 + STRIDE_D * l:OFF_W1 + STRIDE_D * l + D, 0:F] = p['w1'][l]
        buf[OFF_W2 + STRIDE_F * l:OFF_W2 + STRIDE_F * l + F, 0:D] = p['w2'][l]
    buf[OFF_LNG, 0:D] = p['lng'][0]
    buf[OFF_LNB, 0:D] = p['lnb'][0]
    buf[OFF_BP, 0] = p['bp'][0, 0]
    buf[OFF_WP:OFF_WP + L, 0:D] = p['wp']
    buf[OFF_WMOV:OFF_WMOV + L, 0:L] = _moving_avg_matrix(L, MOVING_AVG)
    buf[OFF_S:OFF_S + L * L, 0:L] = _delay_sum_matrix(L)
    return jnp.asarray(buf)


if __name__ == "__main__":
    key = jax.random.PRNGKey(0)
    kx, km, kp = jax.random.split(key, 3)
    x_enc = jax.random.normal(kx, (BATCH, D_FEAT * SEQ_LEN), jnp.float32)
    x_mark_enc = jax.random.normal(km, (BATCH, D_FEAT * SEQ_LEN), jnp.float32)
    x_dec = jnp.zeros((BATCH, D_FEAT * SEQ_LEN), jnp.float32)       # unused
    x_mark_dec = jnp.zeros((BATCH, D_FEAT * SEQ_LEN), jnp.float32)  # unused

    wbuf = pack_weights(make_params(kp))
    fwd = jax.jit(autoformer_forward)
    out = fwd(x_enc, x_mark_enc, x_dec, x_mark_dec, wbuf)
    jax.block_until_ready(out)
    assert out.shape == (BATCH,) and bool(jnp.all(jnp.isfinite(out)))
    print("KERNEL_OK")
</pallas_src>

<mosaic_0001>
module attributes {stable_mosaic.version = 11 : i64} {
  func.func @autoformer_kernel(%arg0: i32, %arg1: memref<1x8x8xf32, #tpu.memory_space<vmem>>, %arg2: memref<1x8x8xf32, #tpu.memory_space<vmem>>, %arg3: memref<208x24xf32, #tpu.memory_space<vmem>>, %arg4: memref<1x8x128xf32, #tpu.memory_space<vmem>>) attributes {dimension_semantics = [#tpu.dimension_semantics<parallel>], iteration_bounds = array<i64: 2>, scalar_prefetch = 0 : i64, scratch_operands = 0 : i64, tpu.core_type = #tpu.core_type<tc>, window_params = [{transform_indices = @transform_0, window_bounds = array<i64: 1, 8, 8>}, {transform_indices = @transform_1, window_bounds = array<i64: 1, 8, 8>}, {pipeline_mode = #tpu.pipeline_mode<synchronous>, transform_indices = @transform_2, window_bounds = array<i64: 208, 24>}, {transform_indices = @transform_3, window_bounds = array<i64: 1, 8, 128>}]} {
    %c0 = arith.constant 0 : index
    %c0_0 = arith.constant 0 : index
    %c0_1 = arith.constant 0 : index
    %0 = vector.load %arg1[%c0, %c0_0, %c0_1] : memref<1x8x8xf32, #tpu.memory_space<vmem>>, vector<1x8x8xf32>
    %1 = vector.shape_cast %0 : vector<1x8x8xf32> to vector<8x8xf32>
    %c0_2 = arith.constant 0 : index
    %c0_3 = arith.constant 0 : index
    %c0_4 = arith.constant 0 : index
    %2 = vector.load %arg2[%c0_2, %c0_3, %c0_4] : memref<1x8x8xf32, #tpu.memory_space<vmem>>, vector<1x8x8xf32>
    %3 = vector.shape_cast %2 : vector<1x8x8xf32> to vector<8x8xf32>
    %c136 = arith.constant 136 : index
    %c0_5 = arith.constant 0 : index
    %4 = vector.load %arg3[%c136, %c0_5] : memref<208x24xf32, #tpu.memory_space<vmem>>, vector<8x8xf32>
    %c144 = arith.constant 144 : index
    %c0_6 = arith.constant 0 : index
    %5 = vector.load %arg3[%c144, %c0_6] : memref<208x24xf32, #tpu.memory_space<vmem>>, vector<64x8xf32>
    %6 = tpu.iota {dimensions = array<i32: 0>} : vector<8x8xi32>
    %7 = tpu.iota {dimensions = array<i32: 1>} : vector<8x8xi32>
    %8 = arith.subi %7, %6 : vector<8x8xi32>
    %c8_i32 = arith.constant 8 : i32
    %9 = vector.broadcast %c8_i32 : i32 to vector<8x8xi32>
    %10 = arith.addi %8, %9 : vector<8x8xi32>
    %c8_i32_7 = arith.constant 8 : i32
    %c0_i32 = arith.constant 0 : i32
    %11 = arith.cmpi eq, %c8_i32_7, %c0_i32 : i32
    %c1_i32 = arith.constant 1 : i32
    %12 = arith.select %11, %c1_i32, %c8_i32_7 : i32
    %13 = vector.broadcast %12 : i32 to vector<8x8xi32>
    %14 = arith.remsi %10, %13 : vector<8x8xi32>
    %c0_i32_8 = arith.constant 0 : i32
    %15 = vector.broadcast %c0_i32_8 : i32 to vector<8x8xi32>
    %16 = arith.cmpi ne, %14, %15 : vector<8x8xi32>
    %c0_i32_9 = arith.constant 0 : i32
    %17 = vector.broadcast %c0_i32_9 : i32 to vector<8x8xi32>
    %18 = arith.cmpi slt, %14, %17 : vector<8x8xi32>
    %c0_i32_10 = arith.constant 0 : i32
    %19 = arith.cmpi slt, %12, %c0_i32_10 : i32
    %20 = vector.broadcast %19 : i1 to vector<8x8xi1>
    %21 = vector.broadcast %20 : vector<8x8xi1> to vector<8x8xi1>
    %22 = arith.xori %18, %21 : vector<8x8xi1>
    %23 = arith.andi %22, %16 : vector<8x8xi1>
    %24 = vector.broadcast %12 : i32 to vector<8x8xi32>
    %25 = arith.addi %14, %24 : vector<8x8xi32>
    %26 = arith.select %23, %25, %14 : vector<8x8xi1>, vector<8x8xi32>
    %27 = tpu.iota {dimensions = array<i32: 1>} : vector<1x8xi32>
    %c0_11 = arith.constant 0 : index
    %c0_12 = arith.constant 0 : index
    %28 = vector.load %arg3[%c0_11, %c0_12] : memref<208x24xf32, #tpu.memory_space<vmem>>, vector<24x8xf32>
    %29 = vector.extract_strided_slice %1 {offsets = [7, 0], sizes = [1, 8], strides = [1, 1]} : vector<8x8xf32> to vector<1x8xf32>
    %30 = vector.extract_strided_slice %1 {offsets = [0, 0], sizes = [7, 8], strides = [1, 1]} : vector<8x8xf32> to vector<7x8xf32>
    %31 = tpu.concatenate %29, %30 in 0 : vector<1x8xf32>, vector<7x8xf32> -> vector<8x8xf32>
    %32 = vector.extract_strided_slice %1 {offsets = [1, 0], sizes = [7, 8], strides = [1, 1]} : vector<8x8xf32> to vector<7x8xf32>
    %33 = vector.extract_strided_slice %1 {offsets = [0, 0], sizes = [1, 8], strides = [1, 1]} : vector<8x8xf32> to vector<1x8xf32>
    %34 = tpu.concatenate %32, %33 in 0 : vector<7x8xf32>, vector<1x8xf32> -> vector<8x8xf32>
    %35 = tpu.concatenate %31, %1, %34 in 1 : vector<8x8xf32>, vector<8x8xf32>, vector<8x8xf32> -> vector<8x24xf32>
    %cst = arith.constant dense<0.000000e+00> : vector<8x8xf32>
    %36 = tpu.matmul %35, %28, %cst {dimension_numbers = #tpu.dot_dimension_numbers<[1], [0], [0], [1], [0, 0, 1, 1], [], []>} : vector<8x24xf32>, vector<24x8xf32>, vector<8x8xf32> -> vector<8x8xf32>
    %c24 = arith.constant 24 : index
    %c0_13 = arith.constant 0 : index
    %37 = vector.load %arg3[%c24, %c0_13] : memref<208x24xf32, #tpu.memory_space<vmem>>, vector<8x24xf32>
    %c40 = arith.constant 40 : index
    %c0_14 = arith.constant 0 : index
    %38 = vector.load %arg3[%c40, %c0_14] : memref<208x24xf32, #tpu.memory_space<vmem>>, vector<1x24xf32>
    %c48 = arith.constant 48 : index
    %c0_15 = arith.constant 0 : index
    %39 = vector.load %arg3[%c48, %c0_15] : memref<208x24xf32, #tpu.memory_space<vmem>>, vector<8x8xf32>
    %c64 = arith.constant 64 : index
    %c0_16 = arith.constant 0 : index
    %40 = vector.load %arg3[%c64, %c0_16] : memref<208x24xf32, #tpu.memory_space<vmem>>, vector<1x8xf32>
    %c72 = arith.constant 72 : index
    %c0_17 = arith.constant 0 : index
    %41 = vector.load %arg3[%c72, %c0_17] : memref<208x24xf32, #tpu.memory_space<vmem>>, vector<8x16xf32>
    %c88 = arith.constant 88 : index
    %c0_18 = arith.constant 0 : index
    %42 = vector.load %arg3[%c88, %c0_18] : memref<208x24xf32, #tpu.memory_space<vmem>>, vector<16x8xf32>
    %cst_19 = arith.constant dense<0.000000e+00> : vector<8x24xf32>
    %43 = tpu.matmul %36, %37, %cst_19 {dimension_numbers = #tpu.dot_dimension_numbers<[1], [0], [0], [1], [0, 0, 1, 1], [], []>} : vector<8x8xf32>, vector<8x24xf32>, vector<8x24xf32> -> vector<8x24xf32>
    %44 = vector.broadcast %38 : vector<1x24xf32> to vector<8x24xf32>
    %45 = arith.addf %43, %44 : vector<8x24xf32>
    %46 = vector.extract_strided_slice %45 {offsets = [0, 0], sizes = [8, 8], strides = [1, 1]} : vector<8x24xf32> to vector<8x8xf32>
    %47 = vector.extract_strided_slice %45 {offsets = [0, 8], sizes = [8, 8], strides = [1, 1]} : vector<8x24xf32> to vector<8x8xf32>
    %48 = vector.extract_strided_slice %45 {offsets = [0, 16], sizes = [8, 8], strides = [1, 1]} : vector<8x24xf32> to vector<8x8xf32>
    %cst_20 = arith.constant dense<0.000000e+00> : vector<8x8xf32>
    %49 = tpu.matmul %46, %47, %cst_20 {dimension_numbers = #tpu.dot_dimension_numbers<[1], [1], [0], [0], [0, 0, 1, 0], [], []>} : vector<8x8xf32>, vector<8x8xf32>, vector<8x8xf32> -> vector<8x8xf32>
    %50 = vector.extract_strided_slice %49 {offsets = [0, 0], sizes = [1, 8], strides = [1, 1]} : vector<8x8xf32> to vector<1x8xf32>
    %51 = vector.extract_strided_slice %49 {offsets = [1, 0], sizes = [1, 8], strides = [1, 1]} : vector<8x8xf32> to vector<1x8xf32>
    %52 = vector.extract_strided_slice %49 {offsets = [2, 0], sizes = [1, 8], strides = [1, 1]} : vector<8x8xf32> to vector<1x8xf32>
    %53 = vector.extract_strided_slice %49 {offsets = [3, 0], sizes = [1, 8], strides = [1, 1]} : vector<8x8xf32> to vector<1x8xf32>
    %54 = vector.extract_strided_slice %49 {offsets = [4, 0], sizes = [1, 8], strides = [1, 1]} : vector<8x8xf32> to vector<1x8xf32>
    %55 = vector.extract_strided_slice %49 {offsets = [5, 0], sizes = [1, 8], strides = [1, 1]} : vector<8x8xf32> to vector<1x8xf32>
    %56 = vector.extract_strided_slice %49 {offsets = [6, 0], sizes = [1, 8], strides = [1, 1]} : vector<8x8xf32> to vector<1x8xf32>
    %57 = vector.extract_strided_slice %49 {offsets = [7, 0], sizes = [1, 8], strides = [1, 1]} : vector<8x8xf32> to vector<1x8xf32>
    %58 = tpu.concatenate %50, %51, %52, %53, %54, %55, %56, %57 in 1 : vector<1x8xf32>, vector<1x8xf32>, vector<1x8xf32>, vector<1x8xf32>, vector<1x8xf32>, vector<1x8xf32>, vector<1x8xf32>, vector<1x8xf32> -> vector<1x64xf32>
    %cst_21 = arith.constant dense<0.000000e+00> : vector<1x8xf32>
    %59 = tpu.matmul %58, %5, %cst_21 {dimension_numbers = #tpu.dot_dimension_numbers<[1], [0], [0], [1], [0, 0, 1, 1], [], []>} : vector<1x64xf32>, vector<64x8xf32>, vector<1x8xf32> -> vector<1x8xf32>
    %cst_22 = arith.constant 1.250000e-01 : f32
    %60 = vector.broadcast %cst_22 : f32 to vector<1x8xf32>
    %61 = arith.mulf %59, %60 : vector<1x8xf32>
    %cst_23 = arith.constant dense<0xFF800000> : vector<1xf32>
    %62 = vector.multi_reduction <maximumf>, %61, %cst_23 [1] : vector<1x8xf32> to vector<1xf32>
    %63 = vector.shape_cast %62 : vector<1xf32> to vector<1x1xf32>
    %64 = vector.broadcast %63 : vector<1x1xf32> to vector<1x8xf32>
    %65 = arith.cmpf oge, %61, %64 : vector<1x8xf32>
    %c8_i32_24 = arith.constant 8 : i32
    %66 = vector.broadcast %c8_i32_24 : i32 to vector<1x8xi32>
    %67 = arith.select %65, %27, %66 : vector<1x8xi1>, vector<1x8xi32>
    %cst_25 = arith.constant dense<2147483647> : vector<1xi32>
    %68 = vector.multi_reduction <minsi>, %67, %cst_25 [1] : vector<1x8xi32> to vector<1xi32>
    %69 = vector.shape_cast %68 : vector<1xi32> to vector<1x1xi32>
    %70 = vector.broadcast %69 : vector<1x1xi32> to vector<1x8xi32>
    %71 = arith.cmpi eq, %27, %70 : vector<1x8xi32>
    %cst_26 = arith.constant -1.000000e+30 : f32
    %72 = vector.broadcast %cst_26 : f32 to vector<1x8xf32>
    %73 = arith.select %71, %72, %61 : vector<1x8xi1>, vector<1x8xf32>
    %cst_27 = arith.constant dense<0xFF800000> : vector<1xf32>
    %74 = vector.multi_reduction <maximumf>, %73, %cst_27 [1] : vector<1x8xf32> to vector<1xf32>
    %75 = vector.shape_cast %74 : vector<1xf32> to vector<1x1xf32>
    %76 = vector.broadcast %75 : vector<1x1xf32> to vector<1x8xf32>
    %77 = arith.cmpf oge, %73, %76 : vector<1x8xf32>
    %c8_i32_28 = arith.constant 8 : i32
    %78 = vector.broadcast %c8_i32_28 : i32 to vector<1x8xi32>
    %79 = arith.select %77, %27, %78 : vector<1x8xi1>, vector<1x8xi32>
    %cst_29 = arith.constant dense<2147483647> : vector<1xi32>
    %80 = vector.multi_reduction <minsi>, %79, %cst_29 [1] : vector<1x8xi32> to vector<1xi32>
    %81 = vector.shape_cast %80 : vector<1xi32> to vector<1x1xi32>
    %82 = arith.subf %63, %63 : vector<1x1xf32>
    %83 = math.exp %82 : vector<1x1xf32>
    %84 = arith.subf %75, %63 : vector<1x1xf32>
    %85 = math.exp %84 : vector<1x1xf32>
    %86 = arith.addf %83, %85 : vector<1x1xf32>
    %cst_30 = arith.constant 0.000000e+00 : f32
    %87 = vector.broadcast %cst_30 : f32 to vector<8x8xf32>
    %88 = arith.divf %83, %86 : vector<1x1xf32>
    %89 = vector.broadcast %69 : vector<1x1xi32> to vector<8x8xi32>
    %90 = arith.cmpi eq, %26, %89 : vector<8x8xi32>
    %91 = arith.extui %90 : vector<8x8xi1> to vector<8x8xi32>
    %92 = arith.sitofp %91 : vector<8x8xi32> to vector<8x8xf32>
    %93 = vector.broadcast %88 : vector<1x1xf32> to vector<8x8xf32>
    %94 = arith.mulf %93, %92 : vector<8x8xf32>
    %95 = arith.addf %87, %94 : vector<8x8xf32>
    %96 = arith.divf %85, %86 : vector<1x1xf32>
    %97 = vector.broadcast %81 : vector<1x1xi32> to vector<8x8xi32>
    %98 = arith.cmpi eq, %26, %97 : vector<8x8xi32>
    %99 = arith.extui %98 : vector<8x8xi1> to vector<8x8xi32>
    %100 = arith.sitofp %99 : vector<8x8xi32> to vector<8x8xf32>
    %101 = vector.broadcast %96 : vector<1x1xf32> to vector<8x8xf32>
    %102 = arith.mulf %101, %100 : vector<8x8xf32>
    %103 = arith.addf %95, %102 : vector<8x8xf32>
    %cst_31 = arith.constant dense<0.000000e+00> : vector<8x8xf32>
    %104 = tpu.matmul %103, %48, %cst_31 {dimension_numbers = #tpu.dot_dimension_numbers<[1], [0], [0], [1], [0, 0, 1, 1], [], []>} : vector<8x8xf32>, vector<8x8xf32>, vector<8x8xf32> -> vector<8x8xf32>
    %cst_32 = arith.constant dense<0.000000e+00> : vector<8x8xf32>
    %105 = tpu.matmul %104, %39, %cst_32 {dimension_numbers = #tpu.dot_dimension_numbers<[1], [0], [0], [1], [0, 0, 1, 1], [], []>} : vector<8x8xf32>, vector<8x8xf32>, vector<8x8xf32> -> vector<8x8xf32>
    %106 = vector.broadcast %40 : vector<1x8xf32> to vector<8x8xf32>
    %107 = arith.addf %105, %106 : vector<8x8xf32>
    %108 = arith.addf %36, %107 : vector<8x8xf32>
    %cst_33 = arith.constant dense<0.000000e+00> : vector<8x8xf32>
    %109 = tpu.matmul %4, %108, %cst_33 {dimension_numbers = #tpu.dot_dimension_numbers<[1], [0], [0], [1], [0, 0, 1, 1], [], []>} : vector<8x8xf32>, vector<8x8xf32>, vector<8x8xf32> -> vector<8x8xf32>
    %110 = arith.subf %108, %109 : vector<8x8xf32>
    %cst_34 = arith.constant dense<0.000000e+00> : vector<8x16xf32>
    %111 = tpu.matmul %110, %41, %cst_34 {dimension_numbers = #tpu.dot_dimension_numbers<[1], [0], [0], [1], [0, 0, 1, 1], [], []>} : vector<8x8xf32>, vector<8x16xf32>, vector<8x16xf32> -> vector<8x16xf32>
    %cst_35 = arith.constant 5.000000e-01 : f32
    %112 = vector.broadcast %cst_35 : f32 to vector<8x16xf32>
    %113 = arith.mulf %112, %111 : vector<8x16xf32>
    %cst_36 = arith.constant 0.707106769 : f32
    %114 = vector.broadcast %cst_36 : f32 to vector<8x16xf32>
    %115 = arith.mulf %111, %114 : vector<8x16xf32>
    %116 = math.erf %115 : vector<8x16xf32>
    %cst_37 = arith.constant 1.000000e+00 : f32
    %117 = vector.broadcast %cst_37 : f32 to vector<8x16xf32>
    %118 = arith.addf %117, %116 : vector<8x16xf32>
    %119 = arith.mulf %113, %118 : vector<8x16xf32>
    %cst_38 = arith.constant dense<0.000000e+00> : vector<8x8xf32>
    %120 = tpu.matmul %119, %42, %cst_38 {dimension_numbers = #tpu.dot_dimension_numbers<[1], [0], [0], [1], [0, 0, 1, 1], [], []>} : vector<8x16xf32>, vector<16x8xf32>, vector<8x8xf32> -> vector<8x8xf32>
    %121 = arith.addf %110, %120 : vector<8x8xf32>
    %cst_39 = arith.constant dense<0.000000e+00> : vector<8x8xf32>
    %122 = tpu.matmul %4, %121, %cst_39 {dimension_numbers = #tpu.dot_dimension_numbers<[1], [0], [0], [1], [0, 0, 1, 1], [], []>} : vector<8x8xf32>, vector<8x8xf32>, vector<8x8xf32> -> vector<8x8xf32>
    %123 = arith.subf %121, %122 : vector<8x8xf32>
    %c32 = arith.constant 32 : index
    %c0_40 = arith.constant 0 : index
    %124 = vector.load %arg3[%c32, %c0_40] : memref<208x24xf32, #tpu.memory_space<vmem>>, vector<8x24xf32>
    %c41 = arith.constant 41 : index
    %c0_41 = arith.constant 0 : index
    %125 = vector.load %arg3[%c41, %c0_41] : memref<208x24xf32, #tpu.memory_space<vmem>>, vector<1x24xf32>
    %c56 = arith.constant 56 : index
    %c0_42 = arith.constant 0 : index
    %126 = vector.load %arg3[%c56, %c0_42] : memref<208x24xf32, #tpu.memory_space<vmem>>, vector<8x8xf32>
    %c65 = arith.constant 65 : index
    %c0_43 = arith.constant 0 : index
    %127 = vector.load %arg3[%c65, %c0_43] : memref<208x24xf32, #tpu.memory_space<vmem>>, vector<1x8xf32>
    %c80 = arith.constant 80 : index
    %c0_44 = arith.constant 0 : index
    %128 = vector.load %arg3[%c80, %c0_44] : memref<208x24xf32, #tpu.memory_space<vmem>>, vector<8x16xf32>
    %c104 = arith.constant 104 : index
    %c0_45 = arith.constant 0 : index
    %129 = vector.load %arg3[%c104, %c0_45] : memref<208x24xf32, #tpu.memory_space<vmem>>, vector<16x8xf32>
    %cst_46 = arith.constant dense<0.000000e+00> : vector<8x24xf32>
    %130 = tpu.matmul %123, %124, %cst_46 {dimension_numbers = #tpu.dot_dimension_numbers<[1], [0], [0], [1], [0, 0, 1, 1], [], []>} : vector<8x8xf32>, vector<8x24xf32>, vector<8x24xf32> -> vector<8x24xf32>
    %131 = vector.broadcast %125 : vector<1x24xf32> to vector<8x24xf32>
    %132 = arith.addf %130, %131 : vector<8x24xf32>
    %133 = vector.extract_strided_slice %132 {offsets = [0, 0], sizes = [8, 8], strides = [1, 1]} : vector<8x24xf32> to vector<8x8xf32>
    %134 = vector.extract_strided_slice %132 {offsets = [0, 8], sizes = [8, 8], strides = [1, 1]} : vector<8x24xf32> to vector<8x8xf32>
    %135 = vector.extract_strided_slice %132 {offsets = [0, 16], sizes = [8, 8], strides = [1, 1]} : vector<8x24xf32> to vector<8x8xf32>
    %cst_47 = arith.constant dense<0.000000e+00> : vector<8x8xf32>
    %136 = tpu.matmul %133, %134, %cst_47 {dimension_numbers = #tpu.dot_dimension_numbers<[1], [1], [0], [0], [0, 0, 1, 0], [], []>} : vector<8x8xf32>, vector<8x8xf32>, vector<8x8xf32> -> vector<8x8xf32>
    %137 = vector.extract_strided_slice %136 {offsets = [0, 0], sizes = [1, 8], strides = [1, 1]} : vector<8x8xf32> to vector<1x8xf32>
    %138 = vector.extract_strided_slice %136 {offsets = [1, 0], sizes = [1, 8], strides = [1, 1]} : vector<8x8xf32> to vector<1x8xf32>
    %139 = vector.extract_strided_slice %136 {offsets = [2, 0], sizes = [1, 8], strides = [1, 1]} : vector<8x8xf32> to vector<1x8xf32>
    %140 = vector.extract_strided_slice %136 {offsets = [3, 0], sizes = [1, 8], strides = [1, 1]} : vector<8x8xf32> to vector<1x8xf32>
    %141 = vector.extract_strided_slice %136 {offsets = [4, 0], sizes = [1, 8], strides = [1, 1]} : vector<8x8xf32> to vector<1x8xf32>
    %142 = vector.extract_strided_slice %136 {offsets = [5, 0], sizes = [1, 8], strides = [1, 1]} : vector<8x8xf32> to vector<1x8xf32>
    %143 = vector.extract_strided_slice %136 {offsets = [6, 0], sizes = [1, 8], strides = [1, 1]} : vector<8x8xf32> to vector<1x8xf32>
    %144 = vector.extract_strided_slice %136 {offsets = [7, 0], sizes = [1, 8], strides = [1, 1]} : vector<8x8xf32> to vector<1x8xf32>
    %145 = tpu.concatenate %137, %138, %139, %140, %141, %142, %143, %144 in 1 : vector<1x8xf32>, vector<1x8xf32>, vector<1x8xf32>, vector<1x8xf32>, vector<1x8xf32>, vector<1x8xf32>, vector<1x8xf32>, vector<1x8xf32> -> vector<1x64xf32>
    %cst_48 = arith.constant dense<0.000000e+00> : vector<1x8xf32>
    %146 = tpu.matmul %145, %5, %cst_48 {dimension_numbers = #tpu.dot_dimension_numbers<[1], [0], [0], [1], [0, 0, 1, 1], [], []>} : vector<1x64xf32>, vector<64x8xf32>, vector<1x8xf32> -> vector<1x8xf32>
    %cst_49 = arith.constant 1.250000e-01 : f32
    %147 = vector.broadcast %cst_49 : f32 to vector<1x8xf32>
    %148 = arith.mulf %146, %147 : vector<1x8xf32>
    %cst_50 = arith.constant dense<0xFF800000> : vector<1xf32>
    %149 = vector.multi_reduction <maximumf>, %148, %cst_50 [1] : vector<1x8xf32> to vector<1xf32>
    %150 = vector.shape_cast %149 : vector<1xf32> to vector<1x1xf32>
    %151 = vector.broadcast %150 : vector<1x1xf32> to vector<1x8xf32>
    %152 = arith.cmpf oge, %148, %151 : vector<1x8xf32>
    %c8_i32_51 = arith.constant 8 : i32
    %153 = vector.broadcast %c8_i32_51 : i32 to vector<1x8xi32>
    %154 = arith.select %152, %27, %153 : vector<1x8xi1>, vector<1x8xi32>
    %cst_52 = arith.constant dense<2147483647> : vector<1xi32>
    %155 = vector.multi_reduction <minsi>, %154, %cst_52 [1] : vector<1x8xi32> to vector<1xi32>
    %156 = vector.shape_cast %155 : vector<1xi32> to vector<1x1xi32>
    %157 = vector.broadcast %156 : vector<1x1xi32> to vector<1x8xi32>
    %158 = arith.cmpi eq, %27, %157 : vector<1x8xi32>
    %cst_53 = arith.constant -1.000000e+30 : f32
    %159 = vector.broadcast %cst_53 : f32 to vector<1x8xf32>
    %160 = arith.select %158, %159, %148 : vector<1x8xi1>, vector<1x8xf32>
    %cst_54 = arith.constant dense<0xFF800000> : vector<1xf32>
    %161 = vector.multi_reduction <maximumf>, %160, %cst_54 [1] : vector<1x8xf32> to vector<1xf32>
    %162 = vector.shape_cast %161 : vector<1xf32> to vector<1x1xf32>
    %163 = vector.broadcast %162 : vector<1x1xf32> to vector<1x8xf32>
    %164 = arith.cmpf oge, %160, %163 : vector<1x8xf32>
    %c8_i32_55 = arith.constant 8 : i32
    %165 = vector.broadcast %c8_i32_55 : i32 to vector<1x8xi32>
    %166 = arith.select %164, %27, %165 : vector<1x8xi1>, vector<1x8xi32>
    %cst_56 = arith.constant dense<2147483647> : vector<1xi32>
    %167 = vector.multi_reduction <minsi>, %166, %cst_56 [1] : vector<1x8xi32> to vector<1xi32>
    %168 = vector.shape_cast %167 : vector<1xi32> to vector<1x1xi32>
    %169 = arith.subf %150, %150 : vector<1x1xf32>
    %170 = math.exp %169 : vector<1x1xf32>
    %171 = arith.subf %162, %150 : vector<1x1xf32>
    %172 = math.exp %171 : vector<1x1xf32>
    %173 = arith.addf %170, %172 : vector<1x1xf32>
    %cst_57 = arith.constant 0.000000e+00 : f32
    %174 = vector.broadcast %cst_57 : f32 to vector<8x8xf32>
    %175 = arith.divf %170, %173 : vector<1x1xf32>
    %176 = vector.broadcast %156 : vector<1x1xi32> to vector<8x8xi32>
    %177 = arith.cmpi eq, %26, %176 : vector<8x8xi32>
    %178 = arith.extui %177 : vector<8x8xi1> to vector<8x8xi32>
    %179 = arith.sitofp %178 : vector<8x8xi32> to vector<8x8xf32>
    %180 = vector.broadcast %175 : vector<1x1xf32> to vector<8x8xf32>
    %181 = arith.mulf %180, %179 : vector<8x8xf32>
    %182 = arith.addf %174, %181 : vector<8x8xf32>
    %183 = arith.divf %172, %173 : vector<1x1xf32>
    %184 = vector.broadcast %168 : vector<1x1xi32> to vector<8x8xi32>
    %185 = arith.cmpi eq, %26, %184 : vector<8x8xi32>
    %186 = arith.extui %185 : vector<8x8xi1> to vector<8x8xi32>
    %187 = arith.sitofp %186 : vector<8x8xi32> to vector<8x8xf32>
    %188 = vector.broadcast %183 : vector<1x1xf32> to vector<8x8xf32>
    %189 = arith.mulf %188, %187 : vector<8x8xf32>
    %190 = arith.addf %182, %189 : vector<8x8xf32>
    %cst_58 = arith.constant dense<0.000000e+00> : vector<8x8xf32>
    %191 = tpu.matmul %190, %135, %cst_58 {dimension_numbers = #tpu.dot_dimension_numbers<[1], [0], [0], [1], [0, 0, 1, 1], [], []>} : vector<8x8xf32>, vector<8x8xf32>, vector<8x8xf32> -> vector<8x8xf32>
    %cst_59 = arith.constant dense<0.000000e+00> : vector<8x8xf32>
    %192 = tpu.matmul %191, %126, %cst_59 {dimension_numbers = #tpu.dot_dimension_numbers<[1], [0], [0], [1], [0, 0, 1, 1], [], []>} : vector<8x8xf32>, vector<8x8xf32>, vector<8x8xf32> -> vector<8x8xf32>
    %193 = vector.broadcast %127 : vector<1x8xf32> to vector<8x8xf32>
    %194 = arith.addf %192, %193 : vector<8x8xf32>
    %195 = arith.addf %123, %194 : vector<8x8xf32>
    %cst_60 = arith.constant dense<0.000000e+00> : vector<8x8xf32>
    %196 = tpu.matmul %4, %195, %cst_60 {dimension_numbers = #tpu.dot_dimension_numbers<[1], [0], [0], [1], [0, 0, 1, 1], [], []>} : vector<8x8xf32>, vector<8x8xf32>, vector<8x8xf32> -> vector<8x8xf32>
    %197 = arith.subf %195, %196 : vector<8x8xf32>
    %cst_61 = arith.constant dense<0.000000e+00> : vector<8x16xf32>
    %198 = tpu.matmul %197, %128, %cst_61 {dimension_numbers = #tpu.dot_dimension_numbers<[1], [0], [0], [1], [0, 0, 1, 1], [], []>} : vector<8x8xf32>, vector<8x16xf32>, vector<8x16xf32> -> vector<8x16xf32>
    %cst_62 = arith.constant 5.000000e-01 : f32
    %199 = vector.broadcast %cst_62 : f32 to vector<8x16xf32>
    %200 = arith.mulf %199, %198 : vector<8x16xf32>
    %cst_63 = arith.constant 0.707106769 : f32
    %201 = vector.broadcast %cst_63 : f32 to vector<8x16xf32>
    %202 = arith.mulf %198, %201 : vector<8x16xf32>
    %203 = math.erf %202 : vector<8x16xf32>
    %cst_64 = arith.constant 1.000000e+00 : f32
    %204 = vector.broadcast %cst_64 : f32 to vector<8x16xf32>
    %205 = arith.addf %204, %203 : vector<8x16xf32>
    %206 = arith.mulf %200, %205 : vector<8x16xf32>
    %cst_65 = arith.constant dense<0.000000e+00> : vector<8x8xf32>
    %207 = tpu.matmul %206, %129, %cst_65 {dimension_numbers = #tpu.dot_dimension_numbers<[1], [0], [0], [1], [0, 0, 1, 1], [], []>} : vector<8x16xf32>, vector<16x8xf32>, vector<8x8xf32> -> vector<8x8xf32>
    %208 = arith.addf %197, %207 : vector<8x8xf32>
    %cst_66 = arith.constant dense<0.000000e+00> : vector<8x8xf32>
    %209 = tpu.matmul %4, %208, %cst_66 {dimension_numbers = #tpu.dot_dimension_numbers<[1], [0], [0], [1], [0, 0, 1, 1], [], []>} : vector<8x8xf32>, vector<8x8xf32>, vector<8x8xf32> -> vector<8x8xf32>
    %210 = arith.subf %208, %209 : vector<8x8xf32>
    %c120 = arith.constant 120 : index
    %c0_67 = arith.constant 0 : index
    %211 = vector.load %arg3[%c120, %c0_67] : memref<208x24xf32, #tpu.memory_space<vmem>>, vector<1x8xf32>
    %c121 = arith.constant 121 : index
    %c0_68 = arith.constant 0 : index
    %212 = vector.load %arg3[%c121, %c0_68] : memref<208x24xf32, #tpu.memory_space<vmem>>, vector<1x8xf32>
    %cst_69 = arith.constant dense<0.000000e+00> : vector<8xf32>
    %213 = vector.multi_reduction <add>, %210, %cst_69 [1] : vector<8x8xf32> to vector<8xf32>
    %214 = vector.shape_cast %213 : vector<8xf32> to vector<8x1xf32>
    %cst_70 = arith.constant 8.000000e+00 : f32
    %215 = vector.broadcast %cst_70 : f32 to vector<8x1xf32>
    %216 = arith.divf %214, %215 : vector<8x1xf32>
    %217 = vector.broadcast %216 : vector<8x1xf32> to vector<8x8xf32>
    %218 = arith.subf %210, %217 : vector<8x8xf32>
    %219 = arith.mulf %218, %218 : vector<8x8xf32>
    %cst_71 = arith.constant dense<0.000000e+00> : vector<8xf32>
    %220 = vector.multi_reduction <add>, %219, %cst_71 [1] : vector<8x8xf32> to vector<8xf32>
    %221 = vector.shape_cast %220 : vector<8xf32> to vector<8x1xf32>
    %cst_72 = arith.constant 8.000000e+00 : f32
    %222 = vector.broadcast %cst_72 : f32 to vector<8x1xf32>
    %223 = arith.divf %221, %222 : vector<8x1xf32>
    %224 = vector.broadcast %216 : vector<8x1xf32> to vector<8x8xf32>
    %225 = arith.subf %210, %224 : vector<8x8xf32>
    %cst_73 = arith.constant 9.99999974E-6 : f32
    %226 = vector.broadcast %cst_73 : f32 to vector<8x1xf32>
    %227 = arith.addf %223, %226 : vector<8x1xf32>
    %228 = math.rsqrt %227 : vector<8x1xf32>
    %229 = vector.broadcast %228 : vector<8x1xf32> to vector<8x8xf32>
    %230 = arith.mulf %225, %229 : vector<8x8xf32>
    %231 = vector.broadcast %211 : vector<1x8xf32> to vector<8x8xf32>
    %232 = arith.mulf %230, %231 : vector<8x8xf32>
    %233 = vector.broadcast %212 : vector<1x8xf32> to vector<8x8xf32>
    %234 = arith.addf %232, %233 : vector<8x8xf32>
    %cst_74 = arith.constant dense<0.000000e+00> : vector<8xf32>
    %235 = vector.multi_reduction <add>, %234, %cst_74 [0] : vector<8x8xf32> to vector<8xf32>
    %236 = vector.shape_cast %235 : vector<8xf32> to vector<1x8xf32>
    %cst_75 = arith.constant 8.000000e+00 : f32
    %237 = vector.broadcast %cst_75 : f32 to vector<1x8xf32>
    %238 = arith.divf %236, %237 : vector<1x8xf32>
    %239 = vector.broadcast %238 : vector<1x8xf32> to vector<8x8xf32>
    %240 = arith.subf %234, %239 : vector<8x8xf32>
    %c128 = arith.constant 128 : index
    %c0_76 = arith.constant 0 : index
    %241 = vector.load %arg3[%c128, %c0_76] : memref<208x24xf32, #tpu.memory_space<vmem>>, vector<8x8xf32>
    %c122 = arith.constant 122 : index
    %c0_77 = arith.constant 0 : index
    %242 = vector.load %arg3[%c122, %c0_77] : memref<208x24xf32, #tpu.memory_space<vmem>>, vector<1x1xf32>
    %cst_78 = arith.constant 5.000000e-01 : f32
    %243 = vector.broadcast %cst_78 : f32 to vector<8x8xf32>
    %244 = arith.mulf %243, %240 : vector<8x8xf32>
    %cst_79 = arith.constant 0.707106769 : f32
    %245 = vector.broadcast %cst_79 : f32 to vector<8x8xf32>
    %246 = arith.mulf %240, %245 : vector<8x8xf32>
    %247 = math.erf %246 : vector<8x8xf32>
    %cst_80 = arith.constant 1.000000e+00 : f32
    %248 = vector.broadcast %cst_80 : f32 to vector<8x8xf32>
    %249 = arith.addf %248, %247 : vector<8x8xf32>
    %250 = arith.mulf %244, %249 : vector<8x8xf32>
    %251 = arith.mulf %250, %3 : vector<8x8xf32>
    %252 = arith.mulf %251, %241 : vector<8x8xf32>
    %cst_81 = arith.constant dense<0.000000e+00> : vector<8xf32>
    %253 = vector.multi_reduction <add>, %252, %cst_81 [1] : vector<8x8xf32> to vector<8xf32>
    %254 = vector.shape_cast %253 : vector<8xf32> to vector<8x1xf32>
    %cst_82 = arith.constant dense<0.000000e+00> : vector<1xf32>
    %255 = vector.multi_reduction <add>, %254, %cst_82 [0] : vector<8x1xf32> to vector<1xf32>
    %256 = vector.shape_cast %255 : vector<1xf32> to vector<1x1xf32>
    %257 = arith.addf %256, %242 : vector<1x1xf32>
    %258 = vector.shape_cast %257 : vector<1x1xf32> to vector<1x1xf32>
    %259 = vector.broadcast %258 : vector<1x1xf32> to vector<8x128xf32>
    %c0_83 = arith.constant 0 : index
    %c0_84 = arith.constant 0 : index
    %c0_85 = arith.constant 0 : index
    %260 = vector.load %arg4[%c0_83, %c0_84, %c0_85] : memref<1x8x128xf32, #tpu.memory_space<vmem>>, vector<1x8x128xf32>
    %261 = vector.shape_cast %260 : vector<1x8x128xf32> to vector<8x128xf32>
    %262 = vector.shape_cast %259 : vector<8x128xf32> to vector<1x8x128xf32>
    tpu.vector_store %arg4[%c0_83, %c0_84, %c0_85], %262 {strides = array<i32>} : memref<1x8x128xf32, #tpu.memory_space<vmem>>, vector<1x8x128xf32>,
    return
  }
  func.func @transform_0(%arg0: i32) -> (i32, i32, i32) {
    %c0_i32 = arith.constant 0 : i32
    %c0_i32_0 = arith.constant 0 : i32
    %c0_i32_1 = arith.constant 0 : i32
    return %arg0, %c0_i32, %c0_i32_0 : i32, i32, i32
  }
  func.func @transform_1(%arg0: i32) -> (i32, i32, i32) {
    %c0_i32 = arith.constant 0 : i32
    %c0_i32_0 = arith.constant 0 : i32
    %c0_i32_1 = arith.constant 0 : i32
    return %arg0, %c0_i32, %c0_i32_0 : i32, i32, i32
  }
  func.func @transform_2(%arg0: i32) -> (i32, i32) {
    %c0_i32 = arith.constant 0 : i32
    %c0_i32_0 = arith.constant 0 : i32
    %c0_i32_1 = arith.constant 0 : i32
    return %c0_i32, %c0_i32_0 : i32, i32
  }
  func.func @transform_3(%arg0: i32) -> (i32, i32, i32) {
    %c0_i32 = arith.constant 0 : i32
    %c0_i32_0 = arith.constant 0 : i32
    %c0_i32_1 = arith.constant 0 : i32
    return %arg0, %c0_i32, %c0_i32_0 : i32, i32, i32
  }
}

</mosaic_0001>

<bundles_post_ra>
// kernel: autoformer_forward.1
= control target key start
LH: loop header
LB: loop body
LE: loop exit
PB: predicated region body
PF: predicated region fallthrough
CT: control target
= control target key end

     0   :  { %s2344_s12 = smov 0   ;;  %s2688_s0 = inlined_call_operand.vmem [shape: f32[2,8,8], index: 0, kind: input, shape index: {}]   ;;  %s2689_s1 = inlined_call_operand.vmem [shape: f32[2,8,8], index: 1, kind: input, shape index: {}]   ;;  %s2690_s2 = inlined_call_operand.vmem [shape: f32[208,24], index: 2, kind: input, shape index: {}]   ;;  %s2691_s3 = inlined_call_operand.vmem [shape: f32[2,8,128], index: 3, kind: output, shape index: {}]  }
   0x1 LB: > { %s2036_s13 = sadd.s32 4294967295, %s2311_s12   ;;  %p2040_p0 = scmp.ge.s32.totalorder %s2311_s12, 1  ;;  %s2311_s12 = sphi %s2344_s12, %s13_s12  }
   0x2   : > { %p145_p1 = scmp.lt.s32.totalorder %s2311_s12, 3 }
   0x4   : > { %p146_p2 = pnand %p2040_p0, %p145_p1 }
   0x5   : > { %p171_p3 = scmp.lt.s32.totalorder (!%p146_p2), %s2036_s13, 1  ;;  %s2315_s24 = smov (!%p146_p2), 8  }
   0x6   : > { %149 = sbr.rel (%p146_p2) target bundleno = 6657 (0x1a01), region = 32  ;;  %s2316_s25 = smov (!%p146_p2), 16  }
   0x7   : > { %s2317_s30 = smov (!%p146_p2), 120   ;;  %s2318_s22 = smov (!%p146_p2), 32  }
   0x8   : > { %s2320_s26 = smov (!%p146_p2), 48   ;;  %s2321_s27 = smov (!%p146_p2), 40  }
   0x9   : > { %s2322_s28 = smov (!%p146_p2), 56   ;;  %s2323_s29 = smov (!%p146_p2), 112  }
   0xb   : > { %v214_v0 = vld [vmem:[%s2690_s2 + $0x10] sm:$0xff]  ;;  %v2313_v1 = vmov 0.0   ;;  %v213_v2 = vld [vmem:[%s2690_s2 + $0x8] sm:$0xff]  ;;  %s2693_s13 = smov (!%p171_p3, %s2036_s13), 1  ;;  %vm2314_vm0 = vmmov 0   ;;  %v212_v3 = vld [vmem:[%s2690_s2] sm:$0xff]  ;;  %v194_v54 = vlaneseq }
   0xc   : > { %2133 = vmatprep.subr.mxu0 %v2313_v1  ;;  %2142 = vmatprep.subr.mxu1 %v2313_v1  ;;  %s2368_s20 = sshll.u32 %s2693_s13, 3  ;;  %vm231_vm1 = vcmask 64512   ;;  %vm233_vm2 = vcmask 130048   ;;  %vm235_vm3 = vcmask 195584   ;;  %v309_v11 = vld [vmem:[%s2690_s2 + $0x18] sm:$0xff]  ;;  %v2409_v19 = vld [vmem:[%s2690_s2 + $0xc8] sm:$0xff] }
   0xd   : > { %2134 = vmatpush3.msra.mxu0 %v214_v0  ;;  %2139 = vmatprep.mubr.msk.f32.mxu0 %vm2314_vm0, %v2313_v1  ;;  %s174_s23 = scalar_lea.vmem %s2688_s0, %s2368_s20  ;;  %v2045_v14 = vld [vmem:[%s2690_s2 + $0x28] ss:$0 sm:$0xff]  ;;  %v2416_v20 = vld [vmem:[%s2690_s2 + $0xc0] sm:$0xff]  ;;  %v2421_v21 = vld [vmem:[%s2690_s2 + $0xb8] sm:$0xff]  ;;  %vm502_vm4 = vcmask 261120   ;;  %vm504_vm5 = vcmask 326656   ;;  %s178_s11 = scalar_lea.vmem %s2689_s1, %s2368_s20 }
   0xe   : > { %2135 = vmatprep.subr.mxu0 %v2313_v1  ;;  %2144 = vmatprep.mubr.msk.f32.mxu1 %vm2314_vm0, %v2313_v1  ;;  %v183_v4 = vld [vmem:[%s174_s23] sm:$0xff]  ;;  %v2430_v22 = vld [vmem:[%s2690_s2 + $0xb0] sm:$0xff]  ;;  %v2435_v23 = vld [vmem:[%s2690_s2 + $0xa8] sm:$0xff]  ;;  %s2319_s23 = smov 24   ;;  %vm506_vm6 = vcmask 392192   ;;  %vm508_vm7 = vcmask 457728   ;;  %s182_s19 = scalar_lea.vmem %s2691_s3, %s2368_s20 }
   0xf   : > { %2136 = vmatpush3.msra.mxu0 %v213_v2  ;;  %224 = vrot.lane.b32.xlu0 %v183_v4, %s2315_s24  ;;  %v220_v5 = vrot.slane %v183_v4, 1  ;;  %v216_v6 = vrot.slane %v183_v4, 7  ;;  %v2444_v24 = vld [vmem:[%s2690_s2 + $0xa0] sm:$0xff]  ;;  %v2449_v25 = vld [vmem:[%s2690_s2 + $0x98] sm:$0xff]  ;;  %v2458_v30 = vld [vmem:[%s2690_s2 + $0x90] sm:$0xff]  ;;  %vm510_vm8 = vcmask 523264  }
  0x10   : > { %2137 = vmatprep.subr.mxu0 %v2313_v1  ;;  %2143 = vmatpush3.msra.mxu1 %v309_v11  ;;  %vm585_vm9 = vcmask 57344   ;;  %v2480_v55 = vand.u32 127, %v194_v54 }
  0x11   : > { %2138 = vmatpush3.msra.mxu0 %v212_v3  ;;  %2147 = vmatprep.subr.mxu1 %v2313_v1 }
  0x12   : > { %2152 = vmatprep.subr.mxu0 %v2313_v1 }
  0x13   : > { %228 = vrot.lane.b32.xlu0 %v220_v5, %s2316_s25 }
  0x81   : > { %v225_v7 = vpop.permute.xlu0 %224 }
  0x82   : > { %v232_v8 = vsel %vm231_vm1, %v216_v6, %v225_v7 }
  0x85   : > { %v229_v9 = vpop.permute.xlu0 %228 }
  0x86   : > { %v234_v10 = vsel %vm233_vm2, %v232_v8, %v229_v9 }
  0x87   : > { %2140 = vmatmul.mubr.msk.f32.vlgmr.msra.gmra.mxu0 %vm235_vm3, %v234_v10 }
  0x88   : > { %2168 = vmatprep.mubr.msk.f32.mxu0 %vm2314_vm0, %v2313_v1  ;;  %2153 = vmatpush3.msra.mxu0 %v2409_v19 }
  0x89   : > { %2154 = vmatprep.subr.mxu0 %v2313_v1 }
  0x8a   : > { %2155 = vmatpush3.msra.mxu0 %v2416_v20 }
  0x8b   : > { %2156 = vmatprep.subr.mxu0 %v2313_v1 }
  0x8c   : > { %2157 = vmatpush3.msra.mxu0 %v2421_v21 }
  0x8d   : > { %2158 = vmatprep.subr.mxu0 %v2313_v1 }
  0x8e   : > { %2159 = vmatpush3.msra.mxu0 %v2430_v22 }
  0x8f   : > { %2160 = vmatprep.subr.mxu0 %v2313_v1 }
  0x90   : > { %2161 = vmatpush3.msra.mxu0 %v2435_v23 }
  0x91   : > { %2162 = vmatprep.subr.mxu0 %v2313_v1 }
  0x92   : > { %2163 = vmatpush3.msra.mxu0 %v2444_v24 }
  0x93   : > { %2164 = vmatprep.subr.mxu0 %v2313_v1 }
  0x94   : > { %2165 = vmatpush3.msra.mxu0 %v2449_v25 }
  0x95   : > { %2166 = vmatprep.subr.mxu0 %v2313_v1 }
  0x96   : > { %2167 = vmatpush3.msra.mxu0 %v2458_v30 }
  0x97   : > { %2191 = vmatprep.subr.mxu0 %v2313_v1 }
 0x147   : > { %v2387_v12 = vpop.f32.mrf.mxu0 }
 0x148   : > { %2145 = vmatmul.mubr.msk.f32.vlgmr.msra.gmra.mxu1 %vm231_vm1, %v2387_v12 }
 0x149   : > { %v2141_v13 = vpop.f32.mrf.mxu0  ;;  %2149 = vmatprep.mubr.msk.f32.mxu1 %vm2314_vm0, %v2313_v1 }
 0x208   : > { %v389_v15 = vpop.f32.mrf.mxu1 }
 0x209   : > { %v2396_v16 = vadd.f32 %v2045_v14, %v389_v15 }
 0x20a   : > { %v2146_v17 = vpop.f32.mrf.mxu1 }
 0x20b   : > { %394 = vrot.lane.b32.xlu1 %v2396_v16, %s2317_s30 }
 0x27d   : > { %v395_v18 = vpop.permute.xlu1 %394 }
 0x27e   : > { %2148 = vmatpush3.xpose.msk.msra.mxu1 %vm231_vm1, %v395_v18 }
 0x27f   : > { %2171 = vmatprep.subr.mxu1 %v2313_v1 }
 0x281   : > { %2150 = vmatmul.mubr.msk.f32.vlgmr.msra.gmra.mxu1 %vm231_vm1, %v2396_v16 }
 0x282   : > { %2173 = vmatprep.mubr.msk.f32.mxu1 %vm2314_vm0, %v2313_v1 }
 0x341   : > { %v466_v26 = vpop.f32.mrf.mxu1 }
 0x342   : > { %v475_v27 = vrot.slane %v466_v26, 2  ;;  %v471_v28 = vrot.slane %v466_v26, 1  ;;  %v483_v31 = vrot.slane %v466_v26, 4  ;;  %v479_v32 = vrot.slane %v466_v26, 3 }
 0x343   : > { %v2151_v29 = vpop.f32.mrf.mxu1  ;;  %v491_v33 = vrot.slane %v466_v26, 6  ;;  %v487_v34 = vrot.slane %v466_v26, 5  ;;  %v495_v35 = vrot.slane %v466_v26, 7 }
 0x344   : > { %476 = vrot.lane.b32.xlu0 %v475_v27, %s2316_s25  ;;  %472 = vrot.lane.b32.xlu1 %v471_v28, %s2315_s24 }
 0x348   : > { %484 = vrot.lane.b32.xlu0 %v483_v31, %s2318_s22  ;;  %480 = vrot.lane.b32.xlu1 %v479_v32, %s2319_s23 }
 0x34c   : > { %492 = vrot.lane.b32.xlu0 %v491_v33, %s2320_s26  ;;  %488 = vrot.lane.b32.xlu1 %v487_v34, %s2321_s27 }
 0x350   : > { %496 = vrot.lane.b32.xlu1 %v495_v35, %s2322_s28 }
 0x3b6   : > { %v477_v36 = vpop.permute.xlu0 %476  ;;  %v473_v37 = vpop.permute.xlu1 %472 }
 0x3b7   : > { %v499_v38 = vsel %vm231_vm1, %v466_v26, %v473_v37 }
 0x3b8   : > { %v500_v40 = vsel %vm233_vm2, %v499_v38, %v477_v36 }
 0x3ba   : > { %v485_v39 = vpop.permute.xlu0 %484  ;;  %v481_v41 = vpop.permute.xlu1 %480 }
 0x3bb   : > { %v501_v42 = vsel %vm235_vm3, %v500_v40, %v481_v41 }
 0x3bc   : > { %v503_v43 = vsel %vm502_vm4, %v501_v42, %v485_v39 }
 0x3be   : > { %v489_v44 = vpop.permute.xlu1 %488  ;;  %v493_v45 = vpop.permute.xlu0 %492 }
 0x3bf   : > { %v505_v46 = vsel %vm504_vm5, %v503_v43, %v489_v44 }
 0x3c0   : > { %v507_v47 = vsel %vm506_vm6, %v505_v46, %v493_v45 }
 0x3c2   : > { %v497_v48 = vpop.permute.xlu1 %496 }
 0x3c3   : > { %v509_v49 = vsel %vm508_vm7, %v507_v47, %v497_v48 }
 0x3c4   : > { %2169 = vmatmul.mubr.msk.f32.vlgmr.msra.gmra.mxu0 %vm510_vm8, %v509_v49 }
 0x3c5   : > { %2195 = vmatprep.mubr.msk.f32.mxu0 %vm2314_vm0, %v2313_v1 }
 0x484   : > { %v580_v50 = vpop.f32.mrf.mxu0 }
 0x485   : > { %v584_v51 = vmul.f32 0.125, %v580_v50 }
 0x486   : > { %v2170_v52 = vpop.f32.mrf.mxu0 }
 0x487   : > { %v586_v53 = vsel %vm585_vm9, %v584_v51, -inf }
 0x488   : > { %587 = vmax.xlane.f32.xlu0 %v586_v53 }
 0x511   : > { %v588_v56 = vpop.xlane.xlu0 %587 }
 0x512   : > { %vm589_vm10 = vcmp.ge.f32.partialorder %v584_v51, %v588_v56  ;;  %v628_v29 = vsub.f32 %v588_v56, %v588_v56 }
 0x513   : > { %v590_v57 = vsel %vm589_vm10, %v2480_v55, 8 }
 0x514   : > { %v591_v58 = vsel %vm585_vm9, %v590_v57, 2147483647  ;;  %v629_v32 = vmul.f32 1.442695, %v628_v29 }
 0x515   : > { %v593_v59 = vshra.s32 %v591_v58, 16  ;;  %v592_v61 = vand.u32 65535, %v591_v58  ;;  %v311_v58 = vld [vmem:[%s2690_s2 + $0x30] sm:$0xff] }
 0x517   : > { %v595_v60 = vcvt.s32.f32 %v593_v59  ;;  %v594_v63 = vcvt.s32.f32 %v592_v61  ;;  %v2053_v61 = vld [vmem:[%s2690_s2 + $0x40] ss:$0 sm:$0xff] }
 0x519   : > { %596 = vmin.xlane.f32.xlu1 %v595_v60 }
 0x5a2   : > { %v597_v62 = vpop.xlane.xlu1 %596 }
 0x5a3   : > { %vm598_vm11 = vcmp.eq.f32.partialorder %v595_v60, %v597_v62  ;;  %v603_v2 = vcvt.f32.s32 %v597_v62 }
 0x5a4   : > { %v599_v0 = vsel %vm598_vm11, %v594_v63, inf }
 0x5a5   : > { %600 = vmin.xlane.f32.xlu0 %v599_v0  ;;  %v604_v4 = vshll.u32 %v603_v2, 16 }
 0x62e   : > { %v601_v3 = vpop.xlane.xlu0 %600 }
 0x62f   : > { %v602_v5 = vcvt.f32.s32 %v601_v3  ;;  %v2521_v3 = vld [vmem:[%s2690_s2 + $0x88] sm:$0xff] }
 0x631   : > { %v605_v6 = vadd.s32 %v604_v4, %v602_v5  ;;  %v313_v4 = vld [vmem:[%s2690_s2 + $0x48] sm:$0xff] }
 0x633   : > { %vm606_vm12 = vcmp.eq.s32.totalorder %v2480_v55, %v605_v6 }
 0x634   : > { %v607_v7 = vsel %vm606_vm12, -1e+30, %v584_v51 }
 0x635   : > { %v608_v8 = vsel %vm585_vm9, %v607_v7, -inf }
 0x636   : > { %609 = vmax.xlane.f32.xlu0 %v608_v8  ;;  %v314_v8 = vld [vmem:[%s2690_s2 + $0x58] sm:$0xff] }
 0x6bf   : > { %v610_v9 = vpop.xlane.xlu0 %609 }
 0x6c0   : > { %vm611_vm13 = vcmp.ge.f32.partialorder %v607_v7, %v610_v9  ;;  %v631_v28 = vsub.f32 %v610_v9, %v588_v56  ;;  %v315_v7 = vld [vmem:[%s2690_s2 + $0x60] sm:$0xff] }
 0x6c1   : > { %v612_v10 = vsel %vm611_vm13, %v2480_v55, 8  ;;  %2192 = vmatpush3.msra.mxu0 %v315_v7 }
 0x6c2   : > { %v613_v11 = vsel %vm585_vm9, %v612_v10, 2147483647  ;;  %v632_v31 = vmul.f32 1.442695, %v631_v28  ;;  %2193 = vmatprep.subr.mxu0 %v2313_v1  ;;  %v1115_v28 = vld [vmem:[%s2690_s2 + $0x20] sm:$0xff] }
 0x6c3   : > { %v615_v13 = vshra.s32 %v613_v11, 16  ;;  %v614_v15 = vand.u32 65535, %v613_v11  ;;  %2194 = vmatpush3.msra.mxu0 %v314_v8 }
 0x6c4   : > { %2285 = vpow2.f32 %v632_v31  ;;  %2203 = vmatprep.subr.mxu0 %v2313_v1 }
 0x6c5   : > { %v617_v14 = vcvt.s32.f32 %v615_v13  ;;  %v616_v18 = vcvt.s32.f32 %v614_v15  ;;  %2287 = vpow2.f32 %v629_v32 }
 0x6c7   : > { %618 = vmin.xlane.f32.xlu1 %v617_v14 }
 0x6d1   : > { %v2286_v33 = vpop.eup %2285 }
 0x6d2   : > { %v2288_v34 = vpop.eup %2287 }
 0x6d3   : > { %v634_v35 = vadd.f32 %v2288_v34, %v2286_v33 }
 0x6d5   : > { %2289 = vrcp.f32 %v634_v35 }
 0x6d8   : > { %664 = vrot.lane.b32.xlu1 %v2396_v16, %s2323_s29  ;;  %v195_v16 = vshrl.u32 %v194_v54, 7 }
 0x6da   : > { %v198_v36 = vsub.s32 %v2480_v55, %v195_v16  ;;  %v2492_v38 = vsub.s32 0, %v195_v16 }
 0x6dc   : > { %v199_v37 = vadd.s32 8, %v198_v36  ;;  %v640_v43 = vrot.slane %v605_v6, %v2492_v38 }
 0x6de   : > { %v2494_v41 = vand.u32 7, %v199_v37 }
 0x6e0   : > { %vm641_vm15 = vcmp.eq.s32.totalorder %v2494_v41, %v640_v43 }
 0x6e1   : > { %v2050_v52 = vsel %vm641_vm15, 1.0, %v2313_v1 }
 0x6e2   : > { %v2290_v40 = vpop.eup %2289 }
 0x6e3   : > { %v636_v45 = vmul.f32 %v2290_v40, %v2288_v34  ;;  %v650_v47 = vmul.f32 %v2290_v40, %v2286_v33 }
 0x6e5   : > { %v647_v49 = vrot.slane %v636_v45, %v2492_v38  ;;  %v661_v51 = vrot.slane %v650_v47, %v2492_v38 }
 0x6e7   : > { %v648_v54 = vmul.f32 %v2050_v52, %v647_v49 }
 0x750   : > { %v619_v17 = vpop.xlane.xlu1 %618 }
 0x751   : > { %vm620_vm14 = vcmp.eq.f32.partialorder %v617_v14, %v619_v17  ;;  %v625_v39 = vcvt.f32.s32 %v619_v17 }
 0x752   : > { %v621_v26 = vsel %vm620_vm14, %v616_v18, inf }
 0x753   : > { %622 = vmin.xlane.f32.xlu0 %v621_v26  ;;  %v626_v44 = vshll.u32 %v625_v39, 16 }
 0x754   : > { %v665_v27 = vpop.permute.xlu1 %664 }
 0x755   : > { %2172 = vmatpush3.msra.mxu1 %v665_v27 }
 0x756   : > { %2176 = vmatprep.subr.mxu1 %v2313_v1 }
 0x7dc   : > { %v623_v42 = vpop.xlane.xlu0 %622 }
 0x7dd   : > { %v624_v46 = vcvt.f32.s32 %v623_v42 }
 0x7df   : > { %v627_v48 = vadd.s32 %v626_v44, %v624_v46 }
 0x7e1   : > { %v654_v50 = vrot.slane %v627_v48, %v2492_v38 }
 0x7e3   : > { %vm655_vm10 = vcmp.eq.s32.totalorder %v2494_v41, %v654_v50 }
 0x7e4   : > { %v2051_v53 = vsel %vm655_vm10, 1.0, %v2313_v1 }
 0x7e5   : > { %v662_v56 = vmul.f32 %v2051_v53, %v661_v51 }
 0x7e7   : > { %v663_v57 = vadd.f32 %v662_v56, %v648_v54 }
 0x7e9   : > { %2174 = vmatmul.mubr.msk.f32.vlgmr.msra.gmra.mxu1 %vm231_vm1, %v663_v57 }
 0x7ea   : > { %2178 = vmatprep.mubr.msk.f32.mxu1 %vm2314_vm0, %v2313_v1  ;;  %2177 = vmatpush3.msra.mxu1 %v311_v58 }
 0x7eb   : > { %2181 = vmatprep.subr.mxu1 %v2313_v1 }
 0x8a9   : > { %v736_v59 = vpop.f32.mrf.mxu1 }
 0x8aa   : > { %2179 = vmatmul.mubr.msk.f32.vlgmr.msra.gmra.mxu1 %vm231_vm1, %v736_v59 }
 0x8ab   : > { %v2175_v60 = vpop.f32.mrf.mxu1  ;;  %2183 = vmatprep.mubr.msk.f32.mxu1 %vm2314_vm0, %v2313_v1 }
 0x96a   : > { %v813_v62 = vpop.f32.mrf.mxu1 }
 0x96b   : > { %v814_v63 = vadd.f32 %v2053_v61, %v813_v62 }
 0x96c   : > { %v2180_v0 = vpop.f32.mrf.mxu1 }
 0x96d   : > { %v817_v2 = vadd.f32 %v814_v63, %v2387_v12 }
 0x96f   : > { %2182 = vmatpush3.msra.mxu1 %v817_v2 }
 0x970   : > { %2184 = vmatmul.mubr.msk.f32.vlgmr.msra.gmra.mxu1 %vm231_vm1, %v2521_v3  ;;  %2186 = vmatprep.subr.mxu1 %v2313_v1 }
 0x971   : > { %2188 = vmatprep.mubr.msk.f32.mxu1 %vm2314_vm0, %v2313_v1  ;;  %2187 = vmatpush3.msra.mxu1 %v313_v4 }
 0x972   : > { %2198 = vmatprep.subr.mxu1 %v2313_v1 }
 0xa30   : > { %v887_v12 = vpop.f32.mrf.mxu1 }
 0xa31   : > { %v891_v5 = vsub.f32 %v817_v2, %v887_v12 }
 0xa32   : > { %v2185_v6 = vpop.f32.mrf.mxu1 }
 0xa33   : > { %2189 = vmatmul.mubr.msk.f32.vlgmr.msra.gmra.mxu1 %vm231_vm1, %v891_v5 }
 0xa34   : > { %2200 = vmatprep.mubr.msk.f32.mxu1 %vm2314_vm0, %v2313_v1 }
 0xaf3   : > { %v961_v9 = vpop.f32.mrf.mxu1 }
 0xaf4   : > { %v966_v10 = vmul.f32 0.70710677, %v961_v9  ;;  %v965_v14 = vmul.f32 0.5, %v961_v9 }
 0xaf5   : > { %v2190_v11 = vpop.f32.mrf.mxu1 }
 0xaf6   : > { %2291 = verf.f32 %v966_v10 }
 0xb03   : > { %v2292_v13 = vpop.eup %2291 }
 0xb04   : > { %v968_v15 = vadd.f32 1.0, %v2292_v13 }
 0xb06   : > { %v969_v17 = vmul.f32 %v968_v15, %v965_v14 }
 0xb08   : > { %2196 = vmatmul.mubr.msk.f32.vlgmr.msra.gmra.mxu0 %vm233_vm2, %v969_v17 }
 0xb09   : > { %2205 = vmatprep.mubr.msk.f32.mxu0 %vm2314_vm0, %v2313_v1  ;;  %2204 = vmatpush3.msra.mxu0 %v1115_v28 }
 0xb0a   : > { %2213 = vmatprep.subr.mxu0 %v2313_v1 }
 0xbc8   : > { %v1039_v18 = vpop.f32.mrf.mxu0 }
 0xbc9   : > { %v1043_v26 = vadd.f32 %v1039_v18, %v891_v5 }
 0xbca   : > { %v2197_v27 = vpop.f32.mrf.mxu0 }
 0xbcb   : > { %2199 = vmatpush3.msra.mxu1 %v1043_v26 }
 0xbcc   : > { %2201 = vmatmul.mubr.msk.f32.vlgmr.msra.gmra.mxu1 %vm231_vm1, %v2521_v3  ;;  %2208 = vmatprep.subr.mxu1 %v2313_v1 }
 0xbcd   : > { %2210 = vmatprep.mubr.msk.f32.mxu1 %vm2314_vm0, %v2313_v1 }
 0xc8c   : > { %v1110_v29 = vpop.f32.mrf.mxu1 }
 0xc8d   : > { %v2555_v31 = vsub.f32 %v1043_v26, %v1110_v29 }
 0xc8e   : > { %v2202_v32 = vpop.f32.mrf.mxu1 }
 0xc8f   : > { %2206 = vmatmul.mubr.msk.f32.vlgmr.msra.gmra.mxu0 %vm231_vm1, %v2555_v31 }
 0xc90   : > { %2214 = vmatpush3.msra.mxu0 %v2409_v19  ;;  %2229 = vmatprep.mubr.msk.f32.mxu0 %vm2314_vm0, %v2313_v1  ;;  %v2059_v19 = vld [vmem:[%s2690_s2 + $0x29] ss:$0 sm:$0xff] }
 0xc91   : > { %2215 = vmatprep.subr.mxu0 %v2313_v1 }
 0xc92   : > { %2216 = vmatpush3.msra.mxu0 %v2416_v20 }
 0xc93   : > { %2217 = vmatprep.subr.mxu0 %v2313_v1 }
 0xc94   : > { %2218 = vmatpush3.msra.mxu0 %v2421_v21 }
 0xc95   : > { %2219 = vmatprep.subr.mxu0 %v2313_v1 }
 0xc96   : > { %2220 = vmatpush3.msra.mxu0 %v2430_v22 }
 0xc97   : > { %2221 = vmatprep.subr.mxu0 %v2313_v1 }
 0xc98   : > { %2222 = vmatpush3.msra.mxu0 %v2435_v23 }
 0xc99   : > { %2223 = vmatprep.subr.mxu0 %v2313_v1 }
 0xc9a   : > { %2224 = vmatpush3.msra.mxu0 %v2444_v24 }
 0xc9b   : > { %2225 = vmatprep.subr.mxu0 %v2313_v1 }
 0xc9c   : > { %2226 = vmatpush3.msra.mxu0 %v2449_v25 }
 0xc9d   : > { %2227 = vmatprep.subr.mxu0 %v2313_v1 }
 0xc9e   : > { %2228 = vmatpush3.msra.mxu0 %v2458_v30 }
 0xc9f   : > { %2252 = vmatprep.subr.mxu0 %v2313_v1 }
 0xd4f   : > { %v1195_v20 = vpop.f32.mrf.mxu0 }
 0xd50   : > { %v2580_v21 = vadd.f32 %v2059_v19, %v1195_v20 }
 0xd51   : > { %v2207_v22 = vpop.f32.mrf.mxu0 }
 0xd52   : > { %1200 = vrot.lane.b32.xlu0 %v2580_v21, %s2317_s30 }
 0xdc4   : > { %v1201_v23 = vpop.permute.xlu0 %1200 }
 0xdc5   : > { %2209 = vmatpush3.xpose.msk.msra.mxu1 %vm231_vm1, %v1201_v23 }
 0xdc6   : > { %2232 = vmatprep.subr.mxu1 %v2313_v1 }
 0xdc8   : > { %2211 = vmatmul.mubr.msk.f32.vlgmr.msra.gmra.mxu1 %vm231_vm1, %v2580_v21 }
 0xdc9   : > { %2234 = vmatprep.mubr.msk.f32.mxu1 %vm2314_vm0, %v2313_v1 }
 0xe88   : > { %v1272_v24 = vpop.f32.mrf.mxu1 }
 0xe89   : > { %v1285_v25 = vrot.slane %v1272_v24, 3  ;;  %v1277_v30 = vrot.slane %v1272_v24, 1  ;;  %v1293_v34 = vrot.slane %v1272_v24, 5  ;;  %v1281_v35 = vrot.slane %v1272_v24, 2 }
 0xe8a   : > { %v2212_v33 = vpop.f32.mrf.mxu1  ;;  %v1301_v16 = vrot.slane %v1272_v24, 7  ;;  %v1289_v36 = vrot.slane %v1272_v24, 4  ;;  %v1297_v37 = vrot.slane %v1272_v24, 6 }
 0xe8b   : > { %1286 = vrot.lane.b32.xlu0 %v1285_v25, %s2319_s23  ;;  %1278 = vrot.lane.b32.xlu1 %v1277_v30, %s2315_s24 }
 0xe8f   : > { %1294 = vrot.lane.b32.xlu0 %v1293_v34, %s2321_s27  ;;  %1282 = vrot.lane.b32.xlu1 %v1281_v35, %s2316_s25 }
 0xe93   : > { %1302 = vrot.lane.b32.xlu0 %v1301_v16, %s2322_s28  ;;  %1290 = vrot.lane.b32.xlu1 %v1289_v36, %s2318_s22 }
 0xe97   : > { %1298 = vrot.lane.b32.xlu1 %v1297_v37, %s2320_s26 }
 0xefd   : > { %v1279_v39 = vpop.permute.xlu1 %1278  ;;  %v1287_v40 = vpop.permute.xlu0 %1286 }
 0xefe   : > { %v1305_v42 = vsel %vm231_vm1, %v1272_v24, %v1279_v39 }
 0xf01   : > { %v1283_v43 = vpop.permute.xlu1 %1282  ;;  %v1295_v45 = vpop.permute.xlu0 %1294 }
 0xf02   : > { %v1306_v44 = vsel %vm233_vm2, %v1305_v42, %v1283_v43 }
 0xf03   : > { %v1307_v46 = vsel %vm235_vm3, %v1306_v44, %v1287_v40 }
 0xf05   : > { %v1291_v47 = vpop.permute.xlu1 %1290  ;;  %v1303_v51 = vpop.permute.xlu0 %1302 }
 0xf06   : > { %v1308_v48 = vsel %vm502_vm4, %v1307_v46, %v1291_v47 }
 0xf07   : > { %v1309_v49 = vsel %vm504_vm5, %v1308_v48, %v1295_v45 }
 0xf09   : > { %v1299_v50 = vpop.permute.xlu1 %1298 }
 0xf0a   : > { %v1310_v52 = vsel %vm506_vm6, %v1309_v49, %v1299_v50  ;;  %v1117_v49 = vld [vmem:[%s2690_s2 + $0x38] sm:$0xff]  ;;  %v2067_v50 = vld [vmem:[%s2690_s2 + $0x41] ss:$0 sm:$0xff] }
 0xf0b   : > { %v1311_v53 = vsel %vm508_vm7, %v1310_v52, %v1303_v51 }
 0xf0c   : > { %2230 = vmatmul.mubr.msk.f32.vlgmr.msra.gmra.mxu0 %vm510_vm8, %v1311_v53 }
 0xf0d   : > { %2256 = vmatprep.mubr.msk.f32.mxu0 %vm2314_vm0, %v2313_v1 }
 0xfcc   : > { %v1381_v54 = vpop.f32.mrf.mxu0 }
 0xfcd   : > { %v1385_v56 = vmul.f32 0.125, %v1381_v54 }
 0xfce   : > { %v2231_v57 = vpop.f32.mrf.mxu0 }
 0xfcf   : > { %v1386_v58 = vsel %vm585_vm9, %v1385_v56, -inf }
 0xfd0   : > { %1387 = vmax.xlane.f32.xlu1 %v1386_v58 }
0x1059   : > { %v1388_v59 = vpop.xlane.xlu1 %1387 }
0x105a   : > { %vm1389_vm3 = vcmp.ge.f32.partialorder %v1385_v56, %v1388_v59 }
0x105b   : > { %v1390_v60 = vsel %vm1389_vm3, %v2480_v55, 8 }
0x105c   : > { %v1391_v61 = vsel %vm585_vm9, %v1390_v60, 2147483647  ;;  %v1120_v60 = vld [vmem:[%s2690_s2 + $0x68] sm:$0xff] }
0x105d   : > { %v1393_v62 = vshra.s32 %v1391_v61, 16  ;;  %v1392_v0 = vand.u32 65535, %v1391_v61 }
0x105f   : > { %v1395_v63 = vcvt.s32.f32 %v1393_v62  ;;  %v1394_v4 = vcvt.s32.f32 %v1392_v0 }
0x1061   : > { %1396 = vmin.xlane.f32.xlu0 %v1395_v63 }
0x10ea   : > { %v1397_v2 = vpop.xlane.xlu0 %1396 }
0x10eb   : > { %vm1398_vm4 = vcmp.eq.f32.partialorder %v1395_v63, %v1397_v2  ;;  %v1403_v5 = vcvt.f32.s32 %v1397_v2 }
0x10ec   : > { %v1399_v12 = vsel %vm1398_vm4, %v1394_v4, inf }
0x10ed   : > { %1400 = vmin.xlane.f32.xlu0 %v1399_v12  ;;  %v1404_v7 = vshll.u32 %v1403_v5, 16 }
0x1176   : > { %v1401_v6 = vpop.xlane.xlu0 %1400 }
0x1177   : > { %v1402_v8 = vcvt.f32.s32 %v1401_v6 }
0x1179   : > { %v1405_v9 = vadd.s32 %v1404_v7, %v1402_v8 }
0x117b   : > { %vm1406_vm5 = vcmp.eq.s32.totalorder %v2480_v55, %v1405_v9  ;;  %v1440_v34 = vrot.slane %v1405_v9, %v2492_v38 }
0x117c   : > { %v1407_v10 = vsel %vm1406_vm5, -1e+30, %v1385_v56  ;;  %v1119_v56 = vld [vmem:[%s2690_s2 + $0x50] sm:$0xff] }
0x117d   : > { %v1408_v11 = vsel %vm585_vm9, %v1407_v10, -inf  ;;  %vm1441_vm8 = vcmp.eq.s32.totalorder %v2494_v41, %v1440_v34 }
0x117e   : > { %1409 = vmax.xlane.f32.xlu1 %v1408_v11  ;;  %v2064_v44 = vsel %vm1441_vm8, 1.0, %v2313_v1 }
0x1207   : > { %v1410_v13 = vpop.xlane.xlu1 %1409 }
0x1208   : > { %vm1411_vm6 = vcmp.ge.f32.partialorder %v1407_v10, %v1410_v13  ;;  %v1431_v19 = vsub.f32 %v1410_v13, %v1388_v59 }
0x1209   : > { %v1412_v14 = vsel %vm1411_vm6, %v2480_v55, 8  ;;  %v1428_v55 = vsub.f32 %v1388_v59, %v1388_v59 }
0x120a   : > { %v1413_v15 = vsel %vm585_vm9, %v1412_v14, 2147483647  ;;  %v1432_v20 = vmul.f32 1.442695, %v1431_v19 }
0x120b   : > { %v1415_v17 = vshra.s32 %v1413_v15, 16  ;;  %v1414_v26 = vand.u32 65535, %v1413_v15  ;;  %v1429_v22 = vmul.f32 1.442695, %v1428_v55 }
0x120c   : > { %2293 = vpow2.f32 %v1432_v20 }
0x120d   : > { %v1417_v18 = vcvt.s32.f32 %v1415_v17  ;;  %v1416_v28 = vcvt.s32.f32 %v1414_v26  ;;  %2295 = vpow2.f32 %v1429_v22 }
0x120f   : > { %1418 = vmin.xlane.f32.xlu0 %v1417_v18 }
0x1219   : > { %v2294_v23 = vpop.eup %2293 }
0x121a   : > { %v2296_v24 = vpop.eup %2295 }
0x121b   : > { %v1434_v25 = vadd.f32 %v2296_v24, %v2294_v23 }
0x121d   : > { %2297 = vrcp.f32 %v1434_v25 }
0x1225   : > { %1464 = vrot.lane.b32.xlu0 %v2580_v21, %s2323_s29 }
0x122a   : > { %v2298_v30 = vpop.eup %2297 }
0x122b   : > { %v1436_v16 = vmul.f32 %v2298_v30, %v2296_v24  ;;  %v1450_v37 = vmul.f32 %v2298_v30, %v2294_v23 }
0x122d   : > { %v1447_v40 = vrot.slane %v1436_v16, %v2492_v38  ;;  %v1461_v43 = vrot.slane %v1450_v37, %v2492_v38 }
0x122f   : > { %v1448_v46 = vmul.f32 %v2064_v44, %v1447_v40 }
0x1298   : > { %v1419_v27 = vpop.xlane.xlu0 %1418 }
0x1299   : > { %vm1420_vm7 = vcmp.eq.f32.partialorder %v1417_v18, %v1419_v27  ;;  %v1425_v21 = vcvt.f32.s32 %v1419_v27 }
0x129a   : > { %v1421_v29 = vsel %vm1420_vm7, %v1416_v28, inf }
0x129b   : > { %1422 = vmin.xlane.f32.xlu1 %v1421_v29  ;;  %v1426_v35 = vshll.u32 %v1425_v21, 16 }
0x129c   : > { %v1465_v32 = vpop.permute.xlu0 %1464 }
0x129d   : > { %2233 = vmatpush3.msra.mxu1 %v1465_v32  ;;  %v2074_v32 = vld [vmem:[%s2690_s2 + $0x79] ss:$0 sm:$0xff] }
0x129e   : > { %2237 = vmatprep.subr.mxu1 %v2313_v1 }
0x1324   : > { %v1423_v33 = vpop.xlane.xlu1 %1422 }
0x1325   : > { %v1424_v36 = vcvt.f32.s32 %v1423_v33 }
0x1327   : > { %v1427_v39 = vadd.s32 %v1426_v35, %v1424_v36 }
0x1329   : > { %v1454_v42 = vrot.slane %v1427_v39, %v2492_v38  ;;  %v184_v39 = vld [vmem:[%s178_s11] sm:$0xff] }
0x132b   : > { %vm1455_vm9 = vcmp.eq.s32.totalorder %v2494_v41, %v1454_v42  ;;  %v1947_v42 = vld [vmem:[%s2690_s2 + $0x80] sm:$0xff] }
0x132c   : > { %v2065_v45 = vsel %vm1455_vm9, 1.0, %v2313_v1 }
0x132d   : > { %v1462_v47 = vmul.f32 %v2065_v45, %v1461_v43 }
0x132f   : > { %v1463_v48 = vadd.f32 %v1462_v47, %v1448_v46 }
0x1331   : > { %2235 = vmatmul.mubr.msk.f32.vlgmr.msra.gmra.mxu1 %vm231_vm1, %v1463_v48 }
0x1332   : > { %2239 = vmatprep.mubr.msk.f32.mxu1 %vm2314_vm0, %v2313_v1  ;;  %2238 = vmatpush3.msra.mxu1 %v1117_v49 }
0x1333   : > { %2242 = vmatprep.subr.mxu1 %v2313_v1 }
0x13f1   : > { %v1536_v38 = vpop.f32.mrf.mxu1 }
0x13f2   : > { %2240 = vmatmul.mubr.msk.f32.vlgmr.msra.gmra.mxu1 %vm231_vm1, %v1536_v38 }
0x13f3   : > { %v2236_v41 = vpop.f32.mrf.mxu1  ;;  %2244 = vmatprep.mubr.msk.f32.mxu1 %vm2314_vm0, %v2313_v1 }
0x14b2   : > { %v1613_v51 = vpop.f32.mrf.mxu1 }
0x14b3   : > { %v1614_v52 = vadd.f32 %v2067_v50, %v1613_v51  ;;  %v1948_v50 = vld [vmem:[%s2690_s2 + $0x7a] sm:$0x1] }
0x14b4   : > { %v2241_v53 = vpop.f32.mrf.mxu1 }
0x14b5   : > { %v1617_v54 = vadd.f32 %v1614_v52, %v2555_v31  ;;  %v1121_v31 = vld [vmem:[%s2690_s2 + $0x70] sm:$0xff] }
0x14b6   : > { %2253 = vmatpush3.msra.mxu0 %v1121_v31 }
0x14b7   : > { %2243 = vmatpush3.msra.mxu1 %v1617_v54  ;;  %2254 = vmatprep.subr.mxu0 %v2313_v1 }
0x14b8   : > { %2245 = vmatmul.mubr.msk.f32.vlgmr.msra.gmra.mxu1 %vm231_vm1, %v2521_v3  ;;  %2247 = vmatprep.subr.mxu1 %v2313_v1 }
0x14b9   : > { %2249 = vmatprep.mubr.msk.f32.mxu1 %vm2314_vm0, %v2313_v1  ;;  %2248 = vmatpush3.msra.mxu1 %v1119_v56 }
0x14ba   : > { %2259 = vmatprep.subr.mxu1 %v2313_v1  ;;  %2255 = vmatpush3.msra.mxu0 %v1120_v60 }
0x1578   : > { %v1684_v57 = vpop.f32.mrf.mxu1 }
0x1579   : > { %v1688_v58 = vsub.f32 %v1617_v54, %v1684_v57 }
0x157a   : > { %v2246_v59 = vpop.f32.mrf.mxu1 }
0x157b   : > { %2250 = vmatmul.mubr.msk.f32.vlgmr.msra.gmra.mxu1 %vm231_vm1, %v1688_v58 }
0x157c   : > { %2261 = vmatprep.mubr.msk.f32.mxu1 %vm2314_vm0, %v2313_v1 }
0x163b   : > { %v1758_v61 = vpop.f32.mrf.mxu1 }
0x163c   : > { %v1763_v62 = vmul.f32 0.70710677, %v1758_v61  ;;  %v1762_v2 = vmul.f32 0.5, %v1758_v61 }
0x163d   : > { %v2251_v63 = vpop.f32.mrf.mxu1 }
0x163e   : > { %2299 = verf.f32 %v1763_v62 }
0x164b   : > { %v2300_v0 = vpop.eup %2299 }
0x164c   : > { %v1765_v4 = vadd.f32 1.0, %v2300_v0 }
0x164e   : > { %v1766_v12 = vmul.f32 %v1765_v4, %v1762_v2 }
0x1650   : > { %2257 = vmatmul.mubr.msk.f32.vlgmr.msra.gmra.mxu0 %vm233_vm2, %v1766_v12 }
0x1710   : > { %v1836_v5 = vpop.f32.mrf.mxu0 }
0x1711   : > { %v1840_v6 = vadd.f32 %v1836_v5, %v1688_v58 }
0x1712   : > { %v2258_v7 = vpop.f32.mrf.mxu0 }
0x1713   : > { %2260 = vmatpush3.msra.mxu1 %v1840_v6 }
0x1714   : > { %2262 = vmatmul.mubr.msk.f32.vlgmr.msra.gmra.mxu1 %vm231_vm1, %v2521_v3  ;;  %v2073_v3 = vld [vmem:[%s2690_s2 + $0x78] ss:$0 sm:$0xff] }
0x17d4   : > { %v1907_v8 = vpop.f32.mrf.mxu1 }
0x17d5   : > { %v1911_v1 = vsub.f32 %v1840_v6, %v1907_v8 }
0x17d6   : > { %v2263_v9 = vpop.f32.mrf.mxu1 }
0x17d7   : > { %v1914_v10 = vsel %vm231_vm1, %v1911_v1, 0.0 }
0x17d8   : > { %1915 = vadd.xlane.f32.xlu1 %v1914_v10 }
0x1861   : > { %v1916_v11 = vpop.xlane.xlu1 %1915 }
0x1862   : > { %v1918_v13 = vmul.f32 0.125, %v1916_v11 }
0x1864   : > { %v1919_v14 = vsub.f32 %v1911_v1, %v1918_v13 }
0x1866   : > { %v1920_v15 = vmul.f32 %v1919_v14, %v1919_v14 }
0x1868   : > { %v1921_v17 = vsel %vm231_vm1, %v1920_v15, 0.0 }
0x1869   : > { %1922 = vadd.xlane.f32.xlu1 %v1921_v17 }
0x18f2   : > { %v1923_v18 = vpop.xlane.xlu1 %1922 }
0x18f3   : > { %v1924_v26 = vmul.f32 0.125, %v1923_v18 }
0x18f5   : > { %v1925_v27 = vadd.f32 1e-05, %v1924_v26 }
0x18f7   : > { %2301 = vrsqrt.f32 %v1925_v27 }
0x1904   : > { %v2302_v28 = vpop.eup %2301 }
0x1905   : > { %v1927_v29 = vmul.f32 %v2302_v28, %v1919_v14 }
0x1907   : > { %v1932_v19 = vmul.f32 %v2073_v3, %v1927_v29 }
0x1909   : > { %v1937_v55 = vadd.f32 %v2074_v32, %v1932_v19 }
0x190b   : > { %v1938_v20 = vsel %vm231_vm1, %v1937_v55, 0.0 }
0x190c   : > { %v1939_v22 = vrot.slane %v1938_v20, 4 }
0x190e   : > { %v1940_v23 = vadd.f32 %v1939_v22, %v1938_v20 }
0x1910   : > { %v1941_v24 = vrot.slane %v1940_v23, 2 }
0x1912   : > { %v1942_v25 = vadd.f32 %v1941_v24, %v1940_v23 }
0x1914   : > { %v1943_v21 = vrot.slane %v1942_v25, 1 }
0x1916   : > { %v1944_v30 = vadd.f32 %v1943_v21, %v1942_v25 }
0x1918   : > { %v1945_v33 = vmul.f32 0.125, %v1944_v30 }
0x191a   : > { %v1946_v34 = vsub.f32 %v1937_v55, %v1945_v33 }
0x191c   : > { %v1950_v35 = vmul.f32 0.70710677, %v1946_v34  ;;  %v1949_v36 = vmul.f32 0.5, %v1946_v34 }
0x191e   : > { %2303 = verf.f32 %v1950_v35 }
0x192b   : > { %v2304_v16 = vpop.eup %2303 }
0x192c   : > { %v1952_v37 = vadd.f32 1.0, %v2304_v16 }
0x192e   : > { %v1953_v40 = vmul.f32 %v1952_v37, %v1949_v36 }
0x1930   : > { %v1954_v43 = vmul.f32 %v1953_v40, %v184_v39 }
0x1932   : > { %v1955_v44 = vmul.f32 %v1954_v43, %v1947_v42 }
0x1934   : > { %v1956_v45 = vsel %vm231_vm1, %v1955_v44, 0.0 }
0x1935   : > { %1957 = vadd.xlane.f32.xlu1 %v1956_v45 }
0x19be   : > { %v1958_v46 = vpop.xlane.xlu1 %1957 }
0x19bf   : > { %v1959_v47 = vrot.slane %v1958_v46, 4 }
0x19c1   : > { %v1960_v48 = vadd.f32 %v1959_v47, %v1958_v46 }
0x19c3   : > { %v1961_v49 = vrot.slane %v1960_v48, 2 }
0x19c5   : > { %v1962_v38 = vadd.f32 %v1961_v49, %v1960_v48 }
0x19c7   : > { %v1963_v41 = vrot.slane %v1962_v38, 1 }
0x19c9   : > { %v1964_v51 = vadd.f32 %v1963_v41, %v1962_v38 }
0x19cb   : > { %v1965_v52 = vadd.f32 %v1964_v51, %v1948_v50 }
0x19cd   : > { %2264 = vpush %v1965_v52 }
0x19fe   : > { %s2265_s21 = spop %2264 }
0x19ff   : > { %v1968_v53 = vstv %s2265_s21 }
0x1a00   : > { %1970 = vst [vmem:[%s182_s19] sm:$0xff] %v1968_v53 }
0x1a01 PF: > { %s13_s12 = sadd.s32 1, %s2311_s12  }
0x1a02   : > { %p10_p4 = scmp.ge.s32.totalorder %s13_s12, 4  }
0x1a04   :  { %12 = sbr.rel (!%p10_p4) target bundleno = 1 (0x1), region = 65 }

</bundles_post_ra>
